<compile_context>
chip_gen: v7x
topology: tpu7x:2x2x1
jax: 0.10.0
libtpu: 0.0.40
codegen_flags: <defaults>
</compile_context>

<pallas_src>
import functools

import jax
import jax.numpy as jnp
from jax.experimental import pallas as pl
from jax.experimental.pallas import tpu as pltpu

EMBED_DIM = 256
NUM_LAYERS = 5
HID1 = 256      # lin1 out
HID2 = 64       # lin2 out
LANE_PAD = 128  # padded output width for lin3 (true width = 1)
SEED_SLOT = 1                          # ping-pong slot layer 0 reads (holds x)
FINAL_SLOT = (NUM_LAYERS - 1) % 2      # slot holding the final GIN output (= 0)


def gnnet_kernel(x_hbm_ref, adj_ref, w_ref, b_ref,
                 pmask_ref, nodegraph_ref, invc_ref,
                 wl1m_ref, wl1x_ref, bl1_ref,
                 wl2_ref, bl2_ref, wl3_ref, bl3_ref,
                 out_ref,
                 h_buf, maxp_ref):
    """Grid = (layer, node-row block).

    adj_ref : [tile, Np] bf16 row block of (A + I), streamed per grid step.
    w_ref   : [1, D, D]  bf16 weights of the current GIN layer.
    b_ref   : [1, 1, D]  f32  bias of the current GIN layer.
    h_buf   : [2*Np, D]  bf16 ping-pong activation scratch (slot = layer parity).
    maxp_ref: [Bp, D]    f32  per-graph max-pool accumulator.
    """
    l = pl.program_id(0)
    i = pl.program_id(1)
    n_blocks = pl.num_programs(1)

    tile = adj_ref.shape[0]
    n_pad = adj_ref.shape[1]

    # Seed the "previous activation" slot with the input node features exactly once
    # (x lives in HBM via memory_space=pl.ANY; one blocking DMA, no pipeline buffers).
    @pl.when((l == 0) & (i == 0))
    def _():
        pltpu.sync_copy(x_hbm_ref,
                        h_buf.at[SEED_SLOT * n_pad:(SEED_SLOT + 1) * n_pad])

    read_off = pl.multiple_of(((l + 1) % 2) * n_pad, 128)
    write_off = (l % 2) * n_pad

    # GIN layer l on node rows [i*tile, (i+1)*tile):
    #   h_new = ReLU( ((A + I)[rows, :] @ h_prev) @ W_l + b_l )     (GINConv eps = 0)
    h_prev = h_buf[pl.ds(read_off, n_pad), :]                      # [Np, D]   bf16
    z = jnp.dot(adj_ref[...], h_prev,
                preferred_element_type=jnp.float32)                # [tile, D] f32
    h_new = jnp.maximum(
        jnp.dot(z.astype(jnp.bfloat16), w_ref[0],
                preferred_element_type=jnp.float32) + b_ref[0],
        0.0)                                                       # [tile, D] f32
    row0 = pl.multiple_of(write_off + i * tile, 128)
    h_buf[pl.ds(row0, tile), :] = h_new.astype(jnp.bfloat16)

    # After the last row block of the last layer: pooling + MLP head.
    @pl.when((l == NUM_LAYERS - 1) & (i == n_blocks - 1))
    def _():
        h_fin = h_buf[pl.ds(FINAL_SLOT * n_pad, n_pad), :]         # [Np, D] bf16
        pmask = pmask_ref[...]                                     # [Bp, Np] bf16 one-hot
        inv_c = invc_ref[...]                                      # [Bp, 1]  f32

        # global_mean_pool: one-hot matmul with f32 accumulation, scaled by 1/|graph|.
        mean_pool = jnp.dot(pmask, h_fin,
                            preferred_element_type=jnp.float32) * inv_c   # [Bp, D]

        # global_max_pool: per-graph masked reduce into a [Bp, D] scratch
        # (no [Bp, Np, D] temporary).
        node_g = nodegraph_ref[...]                                # [Np, 1] i32, -1 = pad
        neg = jnp.asarray(jnp.finfo(jnp.bfloat16).min, jnp.bfloat16)

        def pool_one(b, carry):
            mask = node_g == b                                     # [Np, 1]
            mx = jnp.max(jnp.where(mask, h_fin, neg),
                         axis=0, keepdims=True)                    # [1, D] bf16
            maxp_ref[pl.ds(b, 1), :] = mx.astype(jnp.float32)
            return carry

        jax.lax.fori_loop(0, maxp_ref.shape[0], pool_one, 0)
        # Empty / padded graph guard (keeps the sentinel out of the head).
        max_pool = jnp.where(inv_c > 0.0, maxp_ref[...], 0.0)      # [Bp, D] f32

        # Head.  lin1 is split over the two pooled halves -> no lane-axis concat.
        h1 = jnp.maximum(
            jnp.dot(mean_pool.astype(jnp.bfloat16), wl1m_ref[...],
                    preferred_element_type=jnp.float32)
            + jnp.dot(max_pool.astype(jnp.bfloat16), wl1x_ref[...],
                      preferred_element_type=jnp.float32)
            + bl1_ref[...],
            0.0)
        h2 = jnp.maximum(
            jnp.dot(h1.astype(jnp.bfloat16), wl2_ref[...],
                    preferred_element_type=jnp.float32) + bl2_ref[...],
            0.0)
        # F.dropout(p=0.5) is identity at inference; bn1/bn2 unused in forward().
        logits = jnp.dot(h2.astype(jnp.bfloat16), wl3_ref[...],
                         preferred_element_type=jnp.float32) + bl3_ref[...]
        out_ref[...] = jax.nn.sigmoid(logits)       # [Bp, LANE_PAD]; only col 0 real


def _vmem_limit_bytes(n_pad, b_pad, tile):
    """Per-generation VMEM limit: estimated resident footprint + margin, capped by
    the chip's actual VMEM capacity (no flat 64 MiB clamp)."""
    d = EMBED_DIM
    est = (2 * tile * n_pad * 2            # streamed adjacency row block, double-buffered
           + 2 * n_pad * d * 2             # ping-pong activation scratch (bf16)
           + 2 * (d * d * 2 + d * 4)       # per-layer GIN W / b blocks, double-buffered
           + 2 * b_pad * n_pad * 2         # graph one-hot mask (double-buffered)
           + b_pad * d * 4                 # max-pool scratch
           + n_pad * d * 4                 # pooling `where` temporaries
           + 6 * tile * d * 4              # z / h_new f32 temporaries
           + 16 * b_pad * max(d, LANE_PAD) * 4   # pooled vectors + head temporaries
           + (1 << 20))                    # small params, output, misc
    cap = 64 << 20
    try:
        cap = int(getattr(pltpu.get_tpu_info(), "vmem_capacity_bytes", cap))
    except Exception:
        pass
    return int(max(32 << 20, min(cap - (8 << 20), est + (32 << 20))))


@functools.partial(jax.jit, static_argnames=("num_graphs",))
def gnnet_forward(x, edge_index, batch, params, num_graphs):
    """x: [N, EMBED_DIM] f32, edge_index: [2, E] i32, batch: [N] i32 -> [num_graphs]."""
    n = x.shape[0]
    n_pad = -(-n // 128) * 128             # MXU/lane-aligned node count
    b_pad = -(-num_graphs // 8) * 8        # sublane-aligned graph count

    # Node-row tile for streaming the adjacency (divides n_pad, block <= ~4 MiB).
    tile = 512
    while tile > 128 and (n_pad % tile != 0 or tile * n_pad * 2 > (4 << 20)):
        tile //= 2
    n_blocks = n_pad // tile

    # Dense (A + I): adj[dst, src] accumulates edge multiplicity (GIN sum aggregation
    # over incoming edges; duplicates double-count exactly like PyG) + self term.
    # TODO(synk): for large sparse graphs replace this dense build + matmul with a
    #             scalar-prefetched edge-list gather/accumulate kernel (O(E*D)).
    src, dst = edge_index[0], edge_index[1]
    adj = (jnp.zeros((n_pad, n_pad), jnp.float32)
           .at[dst, src].add(1.0)
           .at[jnp.arange(n), jnp.arange(n)].add(1.0)).astype(jnp.bfloat16)

    x_p = (jnp.zeros((n_pad, EMBED_DIM), jnp.float32)
           .at[:n, :].set(x)).astype(jnp.bfloat16)

    # Node -> graph id (padded nodes get -1 so they never match a real graph).
    node_graph = jnp.full((n_pad, 1), -1, jnp.int32).at[:n, 0].set(batch)

    # Graph one-hot membership [Bp, Np] + exact f32 1/count per graph.
    one_hot = (batch[None, :] == jnp.arange(b_pad)[:, None]).astype(jnp.float32)
    one_hot = jnp.zeros((b_pad, n_pad), jnp.float32).at[:, :n].set(one_hot)
    counts = one_hot.sum(axis=1, keepdims=True)
    inv_counts = jnp.where(counts > 0, 1.0 / jnp.maximum(counts, 1.0), 0.0)
    pmask = one_hot.astype(jnp.bfloat16)

    def full_spec(arr):
        return pl.BlockSpec(arr.shape, lambda l, i: (0, 0))

    in_specs = [
        pl.BlockSpec(memory_space=pl.ANY),                                # x (HBM, one DMA)
        pl.BlockSpec((tile, n_pad), lambda l, i: (i, 0)),                 # adj row block
        pl.BlockSpec((1, EMBED_DIM, EMBED_DIM), lambda l, i: (l, 0, 0)),  # W_l
        pl.BlockSpec((1, 1, EMBED_DIM), lambda l, i: (l, 0, 0)),          # b_l
        full_spec(pmask),
        full_spec(node_graph),
        full_spec(inv_counts),
        full_spec(params["wl1_mean"]), full_spec(params["wl1_max"]), full_spec(params["bl1"]),
        full_spec(params["wl2"]), full_spec(params["bl2"]),
        full_spec(params["wl3"]), full_spec(params["bl3"]),
    ]

    out = pl.pallas_call(
        gnnet_kernel,
        out_shape=jax.ShapeDtypeStruct((b_pad, LANE_PAD), jnp.float32),
        grid=(NUM_LAYERS, n_blocks),
        in_specs=in_specs,
        out_specs=pl.BlockSpec((b_pad, LANE_PAD), lambda l, i: (0, 0)),
        scratch_shapes=[
            pltpu.VMEM((2 * n_pad, EMBED_DIM), jnp.bfloat16),   # ping-pong activations
            pltpu.VMEM((b_pad, EMBED_DIM), jnp.float32),        # max-pool accumulator
        ],
        compiler_params=pltpu.CompilerParams(
            # Row blocks of layer l read the full layer l-1 activations held in
            # scratch, so both grid axes must stay sequential on one core.
            dimension_semantics=("arbitrary", "arbitrary"),
            vmem_limit_bytes=_vmem_limit_bytes(n_pad, b_pad, tile)),
    )(x_p, adj, params["gin_w"], params["gin_b"],
      pmask, node_graph, inv_counts,
      params["wl1_mean"], params["wl1_max"], params["bl1"],
      params["wl2"], params["bl2"], params["wl3"], params["bl3"])

    return out[:num_graphs, 0]   # sigmoid(lin3(x)).squeeze(1): [B]


def gnnet_reference(x, edge_index, batch, params, num_graphs):
    """Pure-JAX f32 reference (same bf16-rounded parameters) for a tolerance check."""
    n = x.shape[0]
    src, dst = edge_index[0], edge_index[1]
    adj = (jnp.zeros((n, n), jnp.float32)
           .at[dst, src].add(1.0)
           .at[jnp.arange(n), jnp.arange(n)].add(1.0))
    h = x
    for l in range(NUM_LAYERS):
        z = adj @ h
        h = jax.nn.relu(z @ params["gin_w"][l].astype(jnp.float32)
                        + params["gin_b"][l])
    sums = jax.ops.segment_sum(h, batch, num_segments=num_graphs)
    counts = jax.ops.segment_sum(jnp.ones((n, 1), jnp.float32), batch,
                                 num_segments=num_graphs)
    mean_pool = sums / jnp.maximum(counts, 1.0)
    max_pool = jax.ops.segment_max(h, batch, num_segments=num_graphs)
    h1 = jax.nn.relu(mean_pool @ params["wl1_mean"].astype(jnp.float32)
                     + max_pool @ params["wl1_max"].astype(jnp.float32)
                     + params["bl1"])
    h2 = jax.nn.relu(h1 @ params["wl2"].astype(jnp.float32) + params["bl2"])
    logits = h2 @ params["wl3"].astype(jnp.float32)[:, :1] + params["bl3"][:, :1]
    return jax.nn.sigmoid(logits)[:, 0]


def init_params(key):
    """Deterministic synthetic parameters matching the module's shapes.
    Linear weights stored as [in, out] (pre-transposed for h @ W) in bf16; biases f32.
    The 5 GIN MLPs are stacked so the kernel streams one layer's weights per grid
    step; lin1 is pre-split into mean/max halves; lin3 output is lane-padded to 128."""
    ks = jax.random.split(key, 8)

    def lin(k, fan_in, fan_out):
        kw, kb = jax.random.split(k)
        s = 1.0 / jnp.sqrt(jnp.float32(fan_in))
        w = jax.random.uniform(kw, (fan_in, fan_out), jnp.float32, -s, s)
        b = jax.random.uniform(kb, (1, fan_out), jnp.float32, -s, s)
        return w, b

    p = {}
    gin_w, gin_b = [], []
    for i in range(NUM_LAYERS):
        w, b = lin(ks[i], EMBED_DIM, EMBED_DIM)
        gin_w.append(w.astype(jnp.bfloat16))
        gin_b.append(b)
    p["gin_w"] = jnp.stack(gin_w)                       # [5, 256, 256] bf16
    p["gin_b"] = jnp.stack(gin_b)                       # [5, 1, 256]   f32

    wl1, bl1 = lin(ks[5], 2 * EMBED_DIM, HID1)          # 512 -> 256, split in two
    p["wl1_mean"] = wl1[:EMBED_DIM].astype(jnp.bfloat16)
    p["wl1_max"] = wl1[EMBED_DIM:].astype(jnp.bfloat16)
    p["bl1"] = bl1
    wl2, bl2 = lin(ks[6], HID1, HID2)                   # 256 -> 64
    p["wl2"] = wl2.astype(jnp.bfloat16)
    p["bl2"] = bl2
    wl3, bl3 = lin(ks[7], HID2, 1)                      # 64 -> 1
    p["wl3"] = (jnp.zeros((HID2, LANE_PAD), jnp.float32)
                .at[:, :1].set(wl3).astype(jnp.bfloat16))
    p["bl3"] = jnp.zeros((1, LANE_PAD), jnp.float32).at[:, :1].set(bl3)
    return p


if __name__ == "__main__":
    key = jax.random.PRNGKey(0)
    k_param, k_x, k_edge = jax.random.split(key, 3)

    # Small synthetic graph batch: 16 nodes, 40 edges, 2 graphs.
    N, E, B = 16, 40, 2
    x = jax.random.normal(k_x, (N, EMBED_DIM), jnp.float32)
    edge_index = jax.random.randint(k_edge, (2, E), 0, N, jnp.int32)
    batch = jnp.concatenate(
        [jnp.zeros((N // 2,), jnp.int32), jnp.ones((N - N // 2,), jnp.int32)])

    params = init_params(k_param)

    out = gnnet_forward(x, edge_index, batch, params, num_graphs=B)
    out = jax.block_until_ready(out)
    assert out.shape == (B,)
    assert bool(jnp.all(jnp.isfinite(out)))

    # Explicit-tolerance comparison vs the f32 reference (kernel uses bf16 activations).
    ref = gnnet_reference(x, edge_index, batch, params, num_graphs=B)
    assert bool(jnp.max(jnp.abs(out - ref)) < 0.1), (out, ref)

    print("KERNEL_OK")
</pallas_src>

<mosaic_0001>
module attributes {stable_mosaic.version = 11 : i64} {
  func.func private @main(%arg0: i32) attributes {dimension_semantics = [#tpu.dimension_semantics<core_parallel>], iteration_bounds = array<i64: 2>, tpu.core_type = #tpu.core_type<sc_scalar_subcore>, window_params = []} {
    return
  }
}

module attributes {stable_mosaic.version = 11 : i64} {
  func.func private @main(%arg0: i32) attributes {dimension_semantics = [#tpu.dimension_semantics<core_parallel>], iteration_bounds = array<i64: 2>, tpu.core_type = #tpu.core_type<sc_scalar_subcore>, window_params = []} {
    return
  }
}

module attributes {stable_mosaic.version = 11 : i64} {
  func.func @gnnet_kernel(%arg0: i32, %arg1: i32, %arg2: memref<128x256xbf16, #tpu.memory_space<any>>, %arg3: memref<128x128xbf16, #tpu.memory_space<vmem>>, %arg4: memref<1x256x256xbf16, #tpu.memory_space<vmem>>, %arg5: memref<1x1x256xf32, #tpu.memory_space<vmem>>, %arg6: memref<8x128xbf16, #tpu.memory_space<vmem>>, %arg7: memref<128x1xi32, #tpu.memory_space<vmem>>, %arg8: memref<8x1xf32, #tpu.memory_space<vmem>>, %arg9: memref<256x256xbf16, #tpu.memory_space<vmem>>, %arg10: memref<256x256xbf16, #tpu.memory_space<vmem>>, %arg11: memref<1x256xf32, #tpu.memory_space<vmem>>, %arg12: memref<256x64xbf16, #tpu.memory_space<vmem>>, %arg13: memref<1x64xf32, #tpu.memory_space<vmem>>, %arg14: memref<64x128xbf16, #tpu.memory_space<vmem>>, %arg15: memref<1x128xf32, #tpu.memory_space<vmem>>, %arg16: memref<8x128xf32, #tpu.memory_space<vmem>>, %arg17: memref<256x256xbf16, #tpu.memory_space<vmem>>, %arg18: memref<8x256xf32, #tpu.memory_space<vmem>>) attributes {dimension_semantics = [#tpu.dimension_semantics<arbitrary>, #tpu.dimension_semantics<arbitrary>], iteration_bounds = array<i64: 5, 1>, scalar_prefetch = 0 : i64, scratch_operands = 2 : i64, tpu.core_type = #tpu.core_type<tc>, window_params = [{}, {transform_indices = @transform_1, window_bounds = array<i64: 128, 128>}, {transform_indices = @transform_2, window_bounds = array<i64: 1, 256, 256>}, {transform_indices = @transform_3, window_bounds = array<i64: 1, 1, 256>}, {pipeline_mode = #tpu.pipeline_mode<synchronous>, transform_indices = @transform_4, window_bounds = array<i64: 8, 128>}, {pipeline_mode = #tpu.pipeline_mode<synchronous>, transform_indices = @transform_5, window_bounds = array<i64: 128, 1>}, {pipeline_mode = #tpu.pipeline_mode<synchronous>, transform_indices = @transform_6, window_bounds = array<i64: 8, 1>}, {pipeline_mode = #tpu.pipeline_mode<synchronous>, transform_indices = @transform_7, window_bounds = array<i64: 256, 256>}, {pipeline_mode = #tpu.pipeline_mode<synchronous>, transform_indices = @transform_8, window_bounds = array<i64: 256, 256>}, {pipeline_mode = #tpu.pipeline_mode<synchronous>, transform_indices = @transform_9, window_bounds = array<i64: 1, 256>}, {pipeline_mode = #tpu.pipeline_mode<synchronous>, transform_indices = @transform_10, window_bounds = array<i64: 256, 64>}, {pipeline_mode = #tpu.pipeline_mode<synchronous>, transform_indices = @transform_11, window_bounds = array<i64: 1, 64>}, {pipeline_mode = #tpu.pipeline_mode<synchronous>, transform_indices = @transform_12, window_bounds = array<i64: 64, 128>}, {pipeline_mode = #tpu.pipeline_mode<synchronous>, transform_indices = @transform_13, window_bounds = array<i64: 1, 128>}, {pipeline_mode = #tpu.pipeline_mode<synchronous>, transform_indices = @transform_14, window_bounds = array<i64: 8, 128>}]} {
    %c0_i32 = arith.constant 0 : i32
    %0 = arith.cmpi eq, %arg0, %c0_i32 : i32
    %c0_i32_0 = arith.constant 0 : i32
    %1 = arith.cmpi eq, %arg1, %c0_i32_0 : i32
    %2 = arith.andi %0, %1 : i1
    %3 = arith.extui %2 : i1 to i32
    %c0_i32_1 = arith.constant 0 : i32
    %4 = arith.cmpi ne, %3, %c0_i32_1 : i32
    scf.if %4 {
      "tpu.region"() ({
        %54 = tpu.sem_alloc : memref<!tpu.dma_semaphore, #tpu.memory_space<semaphore_mem>>
        %c128_i32_28 = arith.constant 128 : i32
        %c0_i32_29 = arith.constant 0 : i32
        %55 = tpu.memref_slice %arg17[%c128_i32_28, %c0_i32_29] : memref<256x256xbf16, #tpu.memory_space<vmem>> -> memref<128x256xbf16, #tpu.memory_space<vmem>>
        tpu.enqueue_dma source(%arg2 : memref<128x256xbf16, #tpu.memory_space<any>>) target(%55 : memref<128x256xbf16, #tpu.memory_space<vmem>>) target_semaphore(%54 : memref<!tpu.dma_semaphore, #tpu.memory_space<semaphore_mem>>)
        %c128_i32_30 = arith.constant 128 : i32
        %c0_i32_31 = arith.constant 0 : i32
        %56 = tpu.memref_slice %arg17[%c128_i32_30, %c0_i32_31] : memref<256x256xbf16, #tpu.memory_space<vmem>> -> memref<128x256xbf16, #tpu.memory_space<vmem>>
        tpu.wait_dma2 semaphore(%54 : memref<!tpu.dma_semaphore, #tpu.memory_space<semaphore_mem>>) src(%arg2 : memref<128x256xbf16, #tpu.memory_space<any>>) dst(%56 : memref<128x256xbf16, #tpu.memory_space<vmem>>)
        tpu.yield
      }) : () -> ()
    } else {
    }
    %c1_i32 = arith.constant 1 : i32
    %5 = arith.addi %arg0, %c1_i32 : i32
    %c2_i32 = arith.constant 2 : i32
    %c0_i32_2 = arith.constant 0 : i32
    %6 = arith.cmpi eq, %c2_i32, %c0_i32_2 : i32
    %c1_i32_3 = arith.constant 1 : i32
    %7 = arith.select %6, %c1_i32_3, %c2_i32 : i32
    %8 = arith.remsi %5, %7 : i32
    %c0_i32_4 = arith.constant 0 : i32
    %9 = arith.cmpi ne, %8, %c0_i32_4 : i32
    %c0_i32_5 = arith.constant 0 : i32
    %10 = arith.cmpi slt, %8, %c0_i32_5 : i32
    %c0_i32_6 = arith.constant 0 : i32
    %11 = arith.cmpi slt, %7, %c0_i32_6 : i32
    %12 = arith.xori %10, %11 : i1
    %13 = arith.andi %12, %9 : i1
    %14 = arith.addi %8, %7 : i32
    %15 = arith.select %13, %14, %8 : i32
    %c128_i32 = arith.constant 128 : i32
    %16 = arith.muli %15, %c128_i32 : i32
    %17 = tpu.assume_multiple %16, 128 : i32
    %c2_i32_7 = arith.constant 2 : i32
    %c0_i32_8 = arith.constant 0 : i32
    %18 = arith.cmpi eq, %c2_i32_7, %c0_i32_8 : i32
    %c1_i32_9 = arith.constant 1 : i32
    %19 = arith.select %18, %c1_i32_9, %c2_i32_7 : i32
    %20 = arith.remsi %arg0, %19 : i32
    %c0_i32_10 = arith.constant 0 : i32
    %21 = arith.cmpi ne, %20, %c0_i32_10 : i32
    %c0_i32_11 = arith.constant 0 : i32
    %22 = arith.cmpi slt, %20, %c0_i32_11 : i32
    %c0_i32_12 = arith.constant 0 : i32
    %23 = arith.cmpi slt, %19, %c0_i32_12 : i32
    %24 = arith.xori %22, %23 : i1
    %25 = arith.andi %24, %21 : i1
    %26 = arith.addi %20, %19 : i32
    %27 = arith.select %25, %26, %20 : i32
    %c128_i32_13 = arith.constant 128 : i32
    %28 = arith.muli %27, %c128_i32_13 : i32
    %29 = arith.index_cast %17 : i32 to index
    %c0 = arith.constant 0 : index
    %30 = vector.load %arg17[%29, %c0] : memref<256x256xbf16, #tpu.memory_space<vmem>>, vector<128x256xbf16>
    %c0_14 = arith.constant 0 : index
    %c0_15 = arith.constant 0 : index
    %31 = vector.load %arg3[%c0_14, %c0_15] : memref<128x128xbf16, #tpu.memory_space<vmem>>, vector<128x128xbf16>
    %cst = arith.constant dense<0.000000e+00> : vector<128x256xf32>
    %32 = tpu.matmul %31, %30, %cst {dimension_numbers = #tpu.dot_dimension_numbers<[1], [0], [0], [1], [0, 0, 1, 1], [], []>} : vector<128x128xbf16>, vector<128x256xbf16>, vector<128x256xf32> -> vector<128x256xf32>
    %33 = arith.truncf %32 : vector<128x256xf32> to vector<128x256xbf16>
    %c0_16 = arith.constant 0 : index
    %c0_17 = arith.constant 0 : index
    %c0_18 = arith.constant 0 : index
    %34 = vector.load %arg4[%c0_16, %c0_17, %c0_18] : memref<1x256x256xbf16, #tpu.memory_space<vmem>>, vector<1x256x256xbf16>
    %35 = vector.shape_cast %34 : vector<1x256x256xbf16> to vector<256x256xbf16>
    %cst_19 = arith.constant dense<0.000000e+00> : vector<128x256xf32>
    %36 = tpu.matmul %33, %35, %cst_19 {dimension_numbers = #tpu.dot_dimension_numbers<[1], [0], [0], [1], [0, 0, 1, 1], [], []>} : vector<128x256xbf16>, vector<256x256xbf16>, vector<128x256xf32> -> vector<128x256xf32>
    %c0_20 = arith.constant 0 : index
    %c0_21 = arith.constant 0 : index
    %c0_22 = arith.constant 0 : index
    %37 = vector.load %arg5[%c0_20, %c0_21, %c0_22] : memref<1x1x256xf32, #tpu.memory_space<vmem>>, vector<1x1x256xf32>
    %38 = vector.shape_cast %37 : vector<1x1x256xf32> to vector<1x256xf32>
    %39 = vector.broadcast %38 : vector<1x256xf32> to vector<128x256xf32>
    %40 = arith.addf %36, %39 : vector<128x256xf32>
    %cst_23 = arith.constant 0.000000e+00 : f32
    %41 = vector.broadcast %cst_23 : f32 to vector<128x256xf32>
    %42 = arith.maximumf %40, %41 : vector<128x256xf32>
    %c128_i32_24 = arith.constant 128 : i32
    %43 = arith.muli %arg1, %c128_i32_24 : i32
    %44 = arith.addi %28, %43 : i32
    %45 = tpu.assume_multiple %44, 128 : i32
    %46 = arith.truncf %42 : vector<128x256xf32> to vector<128x256xbf16>
    %47 = arith.index_cast %45 : i32 to index
    %c0_25 = arith.constant 0 : index
    %48 = vector.load %arg17[%47, %c0_25] : memref<256x256xbf16, #tpu.memory_space<vmem>>, vector<128x256xbf16>
    tpu.vector_store %arg17[%47, %c0_25], %46 {strides = array<i32>} : memref<256x256xbf16, #tpu.memory_space<vmem>>, vector<128x256xbf16>,
    %c4_i32 = arith.constant 4 : i32
    %49 = arith.cmpi eq, %arg0, %c4_i32 : i32
    %c0_i32_26 = arith.constant 0 : i32
    %50 = arith.cmpi eq, %arg1, %c0_i32_26 : i32
    %51 = arith.andi %49, %50 : i1
    %52 = arith.extui %51 : i1 to i32
    %c0_i32_27 = arith.constant 0 : i32
    %53 = arith.cmpi ne, %52, %c0_i32_27 : i32
    scf.if %53 {
      %c0_28 = arith.constant 0 : index
      %c0_29 = arith.constant 0 : index
      %54 = vector.load %arg17[%c0_28, %c0_29] : memref<256x256xbf16, #tpu.memory_space<vmem>>, vector<128x256xbf16>
      %c0_30 = arith.constant 0 : index
      %c0_31 = arith.constant 0 : index
      %55 = vector.load %arg6[%c0_30, %c0_31] : memref<8x128xbf16, #tpu.memory_space<vmem>>, vector<8x128xbf16>
      %c0_32 = arith.constant 0 : index
      %c0_33 = arith.constant 0 : index
      %56 = vector.load %arg8[%c0_32, %c0_33] : memref<8x1xf32, #tpu.memory_space<vmem>>, vector<8x1xf32>
      %cst_34 = arith.constant dense<0.000000e+00> : vector<8x256xf32>
      %57 = tpu.matmul %55, %54, %cst_34 {dimension_numbers = #tpu.dot_dimension_numbers<[1], [0], [0], [1], [0, 0, 1, 1], [], []>} : vector<8x128xbf16>, vector<128x256xbf16>, vector<8x256xf32> -> vector<8x256xf32>
      %58 = vector.broadcast %56 : vector<8x1xf32> to vector<8x256xf32>
      %59 = arith.mulf %57, %58 : vector<8x256xf32>
      %c0_35 = arith.constant 0 : index
      %c0_36 = arith.constant 0 : index
      %60 = vector.load %arg7[%c0_35, %c0_36] : memref<128x1xi32, #tpu.memory_space<vmem>>, vector<128x1xi32>
      %cst_37 = arith.constant -3.389530e+38 : bf16
      %c0_i32_38 = arith.constant 0 : i32
      %c8_i32 = arith.constant 8 : i32
      %61 = arith.addi %c0_i32_38, %c8_i32 : i32
      %c1_i32_39 = arith.constant 1 : i32
      scf.for %arg19 = %c0_i32_38 to %61 step %c1_i32_39  : i32 {
        %101 = vector.broadcast %arg19 : i32 to vector<128x1xi32>
        %102 = arith.cmpi eq, %60, %101 : vector<128x1xi32>
        %103 = vector.shape_cast %102 : vector<128x1xi1> to vector<128x1xi1>
        %104 = vector.broadcast %103 : vector<128x1xi1> to vector<128x256xi1>
        %105 = vector.broadcast %cst_37 : bf16 to vector<128x256xbf16>
        %106 = arith.select %104, %54, %105 : vector<128x256xi1>, vector<128x256xbf16>
        %cst_68 = arith.constant dense<0xFF80> : vector<256xbf16>
        %107 = vector.multi_reduction <maximumf>, %106, %cst_68 [0] : vector<128x256xbf16> to vector<256xbf16>
        %108 = vector.shape_cast %107 : vector<256xbf16> to vector<1x256xbf16>
        %109 = arith.extf %108 : vector<1x256xbf16> to vector<1x256xf32>
        %110 = arith.index_cast %arg19 : i32 to index
        %c0_69 = arith.constant 0 : index
        %111 = vector.load %arg18[%110, %c0_69] : memref<8x256xf32, #tpu.memory_space<vmem>>, vector<1x256xf32>
        tpu.vector_store %arg18[%110, %c0_69], %109 {strides = array<i32>} : memref<8x256xf32, #tpu.memory_space<vmem>>, vector<1x256xf32>,
      }
      %c8_i32_40 = arith.constant 8 : i32
      %cst_41 = arith.constant 0.000000e+00 : f32
      %62 = vector.broadcast %cst_41 : f32 to vector<8x1xf32>
      %63 = arith.cmpf ogt, %56, %62 : vector<8x1xf32>
      %c0_42 = arith.constant 0 : index
      %c0_43 = arith.constant 0 : index
      %64 = vector.load %arg18[%c0_42, %c0_43] : memref<8x256xf32, #tpu.memory_space<vmem>>, vector<8x256xf32>
      %cst_44 = arith.constant 0.000000e+00 : f32
      %65 = vector.shape_cast %63 : vector<8x1xi1> to vector<8x1xi1>
      %66 = vector.broadcast %65 : vector<8x1xi1> to vector<8x256xi1>
      %67 = vector.broadcast %cst_44 : f32 to vector<8x256xf32>
      %68 = arith.select %66, %64, %67 : vector<8x256xi1>, vector<8x256xf32>
      %69 = arith.truncf %59 : vector<8x256xf32> to vector<8x256xbf16>
      %c0_45 = arith.constant 0 : index
      %c0_46 = arith.constant 0 : index
      %70 = vector.load %arg9[%c0_45, %c0_46] : memref<256x256xbf16, #tpu.memory_space<vmem>>, vector<256x256xbf16>
      %cst_47 = arith.constant dense<0.000000e+00> : vector<8x256xf32>
      %71 = tpu.matmul %69, %70, %cst_47 {dimension_numbers = #tpu.dot_dimension_numbers<[1], [0], [0], [1], [0, 0, 1, 1], [], []>} : vector<8x256xbf16>, vector<256x256xbf16>, vector<8x256xf32> -> vector<8x256xf32>
      %72 = arith.truncf %68 : vector<8x256xf32> to vector<8x256xbf16>
      %c0_48 = arith.constant 0 : index
      %c0_49 = arith.constant 0 : index
      %73 = vector.load %arg10[%c0_48, %c0_49] : memref<256x256xbf16, #tpu.memory_space<vmem>>, vector<256x256xbf16>
      %cst_50 = arith.constant dense<0.000000e+00> : vector<8x256xf32>
      %74 = tpu.matmul %72, %73, %cst_50 {dimension_numbers = #tpu.dot_dimension_numbers<[1], [0], [0], [1], [0, 0, 1, 1], [], []>} : vector<8x256xbf16>, vector<256x256xbf16>, vector<8x256xf32> -> vector<8x256xf32>
      %75 = arith.addf %71, %74 : vector<8x256xf32>
      %c0_51 = arith.constant 0 : index
      %c0_52 = arith.constant 0 : index
      %76 = vector.load %arg11[%c0_51, %c0_52] : memref<1x256xf32, #tpu.memory_space<vmem>>, vector<1x256xf32>
      %77 = vector.broadcast %76 : vector<1x256xf32> to vector<8x256xf32>
      %78 = arith.addf %75, %77 : vector<8x256xf32>
      %cst_53 = arith.constant 0.000000e+00 : f32
      %79 = vector.broadcast %cst_53 : f32 to vector<8x256xf32>
      %80 = arith.maximumf %78, %79 : vector<8x256xf32>
      %81 = arith.truncf %80 : vector<8x256xf32> to vector<8x256xbf16>
      %c0_54 = arith.constant 0 : index
      %c0_55 = arith.constant 0 : index
      %82 = vector.load %arg12[%c0_54, %c0_55] : memref<256x64xbf16, #tpu.memory_space<vmem>>, vector<256x64xbf16>
      %cst_56 = arith.constant dense<0.000000e+00> : vector<8x64xf32>
      %83 = tpu.matmul %81, %82, %cst_56 {dimension_numbers = #tpu.dot_dimension_numbers<[1], [0], [0], [1], [0, 0, 1, 1], [], []>} : vector<8x256xbf16>, vector<256x64xbf16>, vector<8x64xf32> -> vector<8x64xf32>
      %c0_57 = arith.constant 0 : index
      %c0_58 = arith.constant 0 : index
      %84 = vector.load %arg13[%c0_57, %c0_58] : memref<1x64xf32, #tpu.memory_space<vmem>>, vector<1x64xf32>
      %85 = vector.broadcast %84 : vector<1x64xf32> to vector<8x64xf32>
      %86 = arith.addf %83, %85 : vector<8x64xf32>
      %cst_59 = arith.constant 0.000000e+00 : f32
      %87 = vector.broadcast %cst_59 : f32 to vector<8x64xf32>
      %88 = arith.maximumf %86, %87 : vector<8x64xf32>
      %89 = arith.truncf %88 : vector<8x64xf32> to vector<8x64xbf16>
      %c0_60 = arith.constant 0 : index
      %c0_61 = arith.constant 0 : index
      %90 = vector.load %arg14[%c0_60, %c0_61] : memref<64x128xbf16, #tpu.memory_space<vmem>>, vector<64x128xbf16>
      %cst_62 = arith.constant dense<0.000000e+00> : vector<8x128xf32>
      %91 = tpu.matmul %89, %90, %cst_62 {dimension_numbers = #tpu.dot_dimension_numbers<[1], [0], [0], [1], [0, 0, 1, 1], [], []>} : vector<8x64xbf16>, vector<64x128xbf16>, vector<8x128xf32> -> vector<8x128xf32>
      %c0_63 = arith.constant 0 : index
      %c0_64 = arith.constant 0 : index
      %92 = vector.load %arg15[%c0_63, %c0_64] : memref<1x128xf32, #tpu.memory_space<vmem>>, vector<1x128xf32>
      %93 = vector.broadcast %92 : vector<1x128xf32> to vector<8x128xf32>
      %94 = arith.addf %91, %93 : vector<8x128xf32>
      %95 = arith.negf %94 : vector<8x128xf32>
      %96 = math.exp %95 : vector<8x128xf32>
      %cst_65 = arith.constant 1.000000e+00 : f32
      %97 = vector.broadcast %cst_65 : f32 to vector<8x128xf32>
      %98 = arith.addf %97, %96 : vector<8x128xf32>
      %99 = arith.divf %97, %98 : vector<8x128xf32>
      %c0_66 = arith.constant 0 : index
      %c0_67 = arith.constant 0 : index
      %100 = vector.load %arg16[%c0_66, %c0_67] : memref<8x128xf32, #tpu.memory_space<vmem>>, vector<8x128xf32>
      tpu.vector_store %arg16[%c0_66, %c0_67], %99 {strides = array<i32>} : memref<8x128xf32, #tpu.memory_space<vmem>>, vector<8x128xf32>,
    } else {
    }
    return
  }
  func.func @transform_1(%arg0: i32, %arg1: i32) -> (i32, i32) {
    %c0_i32 = arith.constant 0 : i32
    %c0_i32_0 = arith.constant 0 : i32
    return %arg1, %c0_i32 : i32, i32
  }
  func.func @transform_2(%arg0: i32, %arg1: i32) -> (i32, i32, i32) {
    %c0_i32 = arith.constant 0 : i32
    %c0_i32_0 = arith.constant 0 : i32
    %c0_i32_1 = arith.constant 0 : i32
    return %arg0, %c0_i32, %c0_i32_0 : i32, i32, i32
  }
  func.func @transform_3(%arg0: i32, %arg1: i32) -> (i32, i32, i32) {
    %c0_i32 = arith.constant 0 : i32
    %c0_i32_0 = arith.constant 0 : i32
    %c0_i32_1 = arith.constant 0 : i32
    return %arg0, %c0_i32, %c0_i32_0 : i32, i32, i32
  }
  func.func @transform_4(%arg0: i32, %arg1: i32) -> (i32, i32) {
    %c0_i32 = arith.constant 0 : i32
    %c0_i32_0 = arith.constant 0 : i32
    %c0_i32_1 = arith.constant 0 : i32
    return %c0_i32, %c0_i32_0 : i32, i32
  }
  func.func @transform_5(%arg0: i32, %arg1: i32) -> (i32, i32) {
    %c0_i32 = arith.constant 0 : i32
    %c0_i32_0 = arith.constant 0 : i32
    %c0_i32_1 = arith.constant 0 : i32
    return %c0_i32, %c0_i32_0 : i32, i32
  }
  func.func @transform_6(%arg0: i32, %arg1: i32) -> (i32, i32) {
    %c0_i32 = arith.constant 0 : i32
    %c0_i32_0 = arith.constant 0 : i32
    %c0_i32_1 = arith.constant 0 : i32
    return %c0_i32, %c0_i32_0 : i32, i32
  }
  func.func @transform_7(%arg0: i32, %arg1: i32) -> (i32, i32) {
    %c0_i32 = arith.constant 0 : i32
    %c0_i32_0 = arith.constant 0 : i32
    %c0_i32_1 = arith.constant 0 : i32
    return %c0_i32, %c0_i32_0 : i32, i32
  }
  func.func @transform_8(%arg0: i32, %arg1: i32) -> (i32, i32) {
    %c0_i32 = arith.constant 0 : i32
    %c0_i32_0 = arith.constant 0 : i32
    %c0_i32_1 = arith.constant 0 : i32
    return %c0_i32, %c0_i32_0 : i32, i32
  }
  func.func @transform_9(%arg0: i32, %arg1: i32) -> (i32, i32) {
    %c0_i32 = arith.constant 0 : i32
    %c0_i32_0 = arith.constant 0 : i32
    %c0_i32_1 = arith.constant 0 : i32
    return %c0_i32, %c0_i32_0 : i32, i32
  }
  func.func @transform_10(%arg0: i32, %arg1: i32) -> (i32, i32) {
    %c0_i32 = arith.constant 0 : i32
    %c0_i32_0 = arith.constant 0 : i32
    %c0_i32_1 = arith.constant 0 : i32
    return %c0_i32, %c0_i32_0 : i32, i32
  }
  func.func @transform_11(%arg0: i32, %arg1: i32) -> (i32, i32) {
    %c0_i32 = arith.constant 0 : i32
    %c0_i32_0 = arith.constant 0 : i32
    %c0_i32_1 = arith.constant 0 : i32
    return %c0_i32, %c0_i32_0 : i32, i32
  }
  func.func @transform_12(%arg0: i32, %arg1: i32) -> (i32, i32) {
    %c0_i32 = arith.constant 0 : i32
    %c0_i32_0 = arith.constant 0 : i32
    %c0_i32_1 = arith.constant 0 : i32
    return %c0_i32, %c0_i32_0 : i32, i32
  }
  func.func @transform_13(%arg0: i32, %arg1: i32) -> (i32, i32) {
    %c0_i32 = arith.constant 0 : i32
    %c0_i32_0 = arith.constant 0 : i32
    %c0_i32_1 = arith.constant 0 : i32
    return %c0_i32, %c0_i32_0 : i32, i32
  }
  func.func @transform_14(%arg0: i32, %arg1: i32) -> (i32, i32) {
    %c0_i32 = arith.constant 0 : i32
    %c0_i32_0 = arith.constant 0 : i32
    %c0_i32_1 = arith.constant 0 : i32
    return %c0_i32, %c0_i32_0 : i32, i32
  }
}

</mosaic_0001>

<bundles_post_ra>
// kernel: gnnet_forward.1
= control target key start
LH: loop header
LB: loop body
LE: loop exit
PB: predicated region body
PF: predicated region fallthrough
CT: control target
= control target key end

     0   :  { %s3070_s29 = smov 0   ;;  %s3072_s30 = smov 0   ;;  %s3965_s0 = inlined_call_operand.vmem [shape: bf16[128,256], index: 0, kind: input, shape index: {}]   ;;  %s3966_s1 = inlined_call_operand.vmem [shape: bf16[128,128], index: 1, kind: input, shape index: {}]   ;;  %s3967_s2 = inlined_call_operand.vmem [shape: bf16[5,256,256], index: 2, kind: input, shape index: {}]   ;;  %s3968_s3 = inlined_call_operand.vmem [shape: f32[5,1,256], index: 3, kind: input, shape index: {}]   ;;  %s3969_s4 = inlined_call_operand.vmem [shape: bf16[8,128], index: 4, kind: input, shape index: {}]   ;;  %s3970_s5 = inlined_call_operand.vmem [shape: s32[128,1], index: 5, kind: input, shape index: {}]   ;;  %s3971_s6 = inlined_call_operand.vmem [shape: f32[8,1], index: 6, kind: input, shape index: {}]   ;;  %s3972_s7 = inlined_call_operand.vmem [shape: bf16[256,256], index: 7, kind: input, shape index: {}]   ;;  %s3973_s8 = inlined_call_operand.vmem [shape: bf16[256,256], index: 8, kind: input, shape index: {}]   ;;  %s3974_s9 = inlined_call_operand.vmem [shape: f32[1,256], index: 9, kind: input, shape index: {}]   ;;  %s3975_s10 = inlined_call_operand.vmem [shape: bf16[256,64], index: 10, kind: input, shape index: {}]   ;;  %s3976_s11 = inlined_call_operand.vmem [shape: f32[1,64], index: 11, kind: input, shape index: {}]   ;;  %s3977_s12 = inlined_call_operand.vmem [shape: bf16[64,128], index: 12, kind: input, shape index: {}]   ;;  %s3978_s13 = inlined_call_operand.vmem [shape: f32[1,128], index: 13, kind: input, shape index: {}]   ;;  %s3979_s14 = inlined_call_operand.vmem [shape: f32[8,128], index: 14, kind: output, shape index: {}]  }
   0x1   :  { %s3074_s15 = smov 0  }
   0x2 LB: > { %3983 = sst [smem:[#allocation7_spill]] %s2979_s30  ;;  %s36_s16 = sadd.s32 1, %s2979_s30  ;;  %s2983_s15 = sphi %s3074_s15, %s24_s15   ;;  %s2979_s30 = sphi %s3072_s30, %s4006_s30   ;;  %s2975_s29 = sphi %s3070_s29, %s4005_s29  }
   0x3   : > { %p2496_p0 = scmp.ge.s32.totalorder %s2983_s15, 1  ;;  %p38_p1 = scmp.ge.s32.totalorder %s36_s16, 5 }
   0x4   : > { %p415_p2 = scmp.lt.s32.totalorder %s2983_s15, 6 }
   0x5   : > { %s4008_s16 = smov (%p38_p1, %s36_s16), 0 }
   0x6   : > { %3984 = sst [smem:[#allocation8_spill]] %s4008_s16  ;;  %p416_p3 = pnand %p2496_p0, %p415_p2 }
   0x7   : > { %p469_p4 = scmp.lt.s32.totalorder (!%p416_p3), %s2975_s29, 4  ;;  %p482_p5 = scmp.eq.s32.totalorder (!%p416_p3), %s2975_s29, 0 }
   0x8   : > { %419 = sbr.rel (%p416_p3) target bundleno = 1828 (0x724), region = 72 }
   0xf   : > { %s470_s17 = scalar_select %p469_p4, %s2975_s29, 4 }
  0x10   : > { %487 = sbr.rel (!%p482_p5) target bundleno = 41 (0x29), region = 76 }
  0x11   : > { %s2660_s18 = sshll.u32 %s470_s17, 8  ;;  %s2499_s19 = sshll.u32 %s470_s17, 1 }
  0x12   : > { %s3096_s22 = scalar_lea.vmem %s3967_s2, %s2660_s18  ;;  %s3101_s25 = scalar_lea.vmem %s3968_s3, %s2499_s19 }
  0x17   : > { %v506_v0 = vld [vmem:[%s3965_s0] sm:$0xf]  ;;  %v508_v1 = vld [vmem:[%s3965_s0 + $0x8] sm:$0xf]  ;;  %v510_v2 = vld [vmem:[%s3965_s0 + $0x4] sm:$0xf] }
  0x18   : > { %507 = vst [vmem:[#allocation2 + $0x80] sm:$0xf] %v506_v0  ;;  %509 = vst [vmem:[#allocation2 + $0x84] sm:$0xf] %v508_v1  ;;  %v512_v3 = vld [vmem:[%s3965_s0 + $0xc] sm:$0xff]   ;;  %v520_v6 = vld [vmem:[%s3965_s0 + $0x1c] sm:$0xff]  }
  0x19   : > { %511 = vst [vmem:[#allocation2 + $0x88] sm:$0xf] %v510_v2  ;;  %v516_v4 = vld [vmem:[%s3965_s0 + $0x18] sm:$0xf]  ;;  %v518_v5 = vld [vmem:[%s3965_s0 + $0x14] sm:$0xf] }
  0x1a   : > { %513 = vst [vmem:[#allocation2 + $0x8c] sm:$0xff] %v512_v3   ;;  %517 = vst [vmem:[#allocation2 + $0x94] sm:$0xf] %v516_v4  ;;  %v524_v7 = vld [vmem:[%s3965_s0 + $0x28] sm:$0xf]  ;;  %v528_v9 = vld [vmem:[%s3965_s0 + $0x2c] sm:$0xff]  }
  0x1b   : > { %519 = vst [vmem:[#allocation2 + $0x98] sm:$0xf] %v518_v5  ;;  %v526_v8 = vld [vmem:[%s3965_s0 + $0x24] sm:$0xf]  ;;  %521 = vst [vmem:[#allocation2 + $0x9c] sm:$0xff] %v520_v6   ;;  %v536_v12 = vld [vmem:[%s3965_s0 + $0x3c] sm:$0xff]  }
  0x1c   : > { %525 = vst [vmem:[#allocation2 + $0xa4] sm:$0xf] %v524_v7  ;;  %527 = vst [vmem:[#allocation2 + $0xa8] sm:$0xf] %v526_v8  ;;  %v532_v10 = vld [vmem:[%s3965_s0 + $0x38] sm:$0xf] }
  0x1d   : > { %v534_v11 = vld [vmem:[%s3965_s0 + $0x34] sm:$0xf]  ;;  %529 = vst [vmem:[#allocation2 + $0xac] sm:$0xff] %v528_v9   ;;  %533 = vst [vmem:[#allocation2 + $0xb4] sm:$0xf] %v532_v10  ;;  %v544_v15 = vld [vmem:[%s3965_s0 + $0x4c] sm:$0xff]  }
  0x1e   : > { %535 = vst [vmem:[#allocation2 + $0xb8] sm:$0xf] %v534_v11  ;;  %v540_v13 = vld [vmem:[%s3965_s0 + $0x48] sm:$0xf]  ;;  %v542_v14 = vld [vmem:[%s3965_s0 + $0x44] sm:$0xf] }
  0x1f   : > { %537 = vst [vmem:[#allocation2 + $0xbc] sm:$0xff] %v536_v12   ;;  %541 = vst [vmem:[#allocation2 + $0xc4] sm:$0xf] %v540_v13  ;;  %v548_v16 = vld [vmem:[%s3965_s0 + $0x58] sm:$0xf]  ;;  %v552_v18 = vld [vmem:[%s3965_s0 + $0x5c] sm:$0xff]  }
  0x20   : > { %543 = vst [vmem:[#allocation2 + $0xc8] sm:$0xf] %v542_v14  ;;  %v550_v17 = vld [vmem:[%s3965_s0 + $0x54] sm:$0xf]  ;;  %545 = vst [vmem:[#allocation2 + $0xcc] sm:$0xff] %v544_v15   ;;  %v560_v21 = vld [vmem:[%s3965_s0 + $0x6c] sm:$0xff]  }
  0x21   : > { %549 = vst [vmem:[#allocation2 + $0xd4] sm:$0xf] %v548_v16  ;;  %551 = vst [vmem:[#allocation2 + $0xd8] sm:$0xf] %v550_v17  ;;  %v556_v19 = vld [vmem:[%s3965_s0 + $0x68] sm:$0xf] }
  0x22   : > { %v558_v20 = vld [vmem:[%s3965_s0 + $0x64] sm:$0xf]  ;;  %553 = vst [vmem:[#allocation2 + $0xdc] sm:$0xff] %v552_v18   ;;  %557 = vst [vmem:[#allocation2 + $0xe4] sm:$0xf] %v556_v19 }
  0x23   : > { %559 = vst [vmem:[#allocation2 + $0xe8] sm:$0xf] %v558_v20  ;;  %v564_v22 = vld [vmem:[%s3965_s0 + $0x78] sm:$0xf]  ;;  %v566_v23 = vld [vmem:[%s3965_s0 + $0x74] sm:$0xf] }
  0x24   : > { %561 = vst [vmem:[#allocation2 + $0xec] sm:$0xff] %v560_v21   ;;  %565 = vst [vmem:[#allocation2 + $0xf4] sm:$0xf] %v564_v22  ;;  %v568_v24 = vld [vmem:[%s3965_s0 + $0x7c] sm:$0xf] }
  0x25   : > { %567 = vst [vmem:[#allocation2 + $0xf8] sm:$0xf] %v566_v23  ;;  %569 = vst [vmem:[#allocation2 + $0xfc] sm:$0xf] %v568_v24 }
  0x26   : > { %664 = vsyncadd [#allocation4], 2048 }
  0x27   : > { %2971 = dma.done.wait [#allocation4], 2048 }
  0x28   : > { %2972 = vsyncadd [#allocation4], 4294965248 }
  0x29 PF: > { %s669_s26 = sadd.s32 1, %s2975_s29  ;;  %v2989_v25 = vmov 0   ;;  %v3181_v26 = vld [vmem:[%s3096_s22 + $0x4] ss:$8 sps:$4 sm:$0xff]   ;;  %v3184_v27 = vld [vmem:[%s3096_s22] ss:$8 sps:$4 sm:$0xff]  }
  0x2a   : > { %p670_p6 = scmp.lt.s32.totalorder %s669_s26, 0  ;;  %s671_s27 = ssub.s32 0, %s669_s26  ;;  %813 = vmatprep.mubr.bf16.mxu0 %v2989_v25  ;;  %v3187_v28 = vld [vmem:[%s3096_s22 + $0x14] ss:$8 sps:$4 sm:$0xff]   ;;  %2705 = vmatprep.subr.bf16.mxu1 %v3181_v26  ;;  %v3198_v32 = vld [vmem:[%s3096_s22 + $0x10] ss:$8 sps:$4 sm:$0xff]  }
  0x2b   : > { %s2501_s28 = smin.u32 %s671_s27, %s669_s26  ;;  %2721 = vmatpush1.bf16.msra.mxu1 %v3184_v27  ;;  %v3201_v33 = vld [vmem:[%s3096_s22 + $0x24] ss:$8 sps:$4 sm:$0xff]   ;;  %v3208_v36 = vld [vmem:[%s3096_s22 + $0x20] ss:$8 sps:$4 sm:$0xff]   ;;  %v3211_v37 = vld [vmem:[%s3096_s22 + $0x34] ss:$8 sps:$4 sm:$0xff]  }
  0x2c   : > { %s673_s17 = sand.u32 1, %s2501_s28   ;;  %2706 = vmatprep.subr.bf16.mxu1 %v3187_v28  ;;  %v3218_v40 = vld [vmem:[%s3096_s22 + $0x30] ss:$8 sps:$4 sm:$0xff]   ;;  %v3221_v41 = vld [vmem:[%s3096_s22 + $0x44] ss:$8 sps:$4 sm:$0xff]   ;;  %p1298_p8 = scmp.eq.s32.totalorder %s2975_s29, 4 }
  0x2d   : > { %s674_s18 = ssub.s32 0, %s673_s17  ;;  %v3228_v44 = vld [vmem:[%s3096_s22 + $0x40] ss:$8 sps:$4 sm:$0xff]   ;;  %v3231_v45 = vld [vmem:[%s3096_s22 + $0x54] ss:$8 sps:$4 sm:$0xff]   ;;  %p683_p9 = scmp.lt.s32.totalorder %s2975_s29, 0 }
  0x2e   : > { %s4010_s18 = smov (!%p670_p6, %s674_s18), %s673_s17  ;;  %v3238_v48 = vld [vmem:[%s3096_s22 + $0x50] ss:$8 sps:$4 sm:$0xff]   ;;  %v3241_v49 = vld [vmem:[%s3096_s22 + $0x64] ss:$8 sps:$4 sm:$0xff]   ;;  %v3248_v52 = vld [vmem:[%s3096_s22 + $0x60] ss:$8 sps:$4 sm:$0xff]  }
  0x2f   : > { %p2503_p7 = scmp.lt.s32.totalorder %s4010_s18, 0  ;;  %s680_s20 = sadd.s32 2, %s4010_s18  ;;  %2722 = vmatpush1.bf16.msra.mxu1 %v3198_v32  ;;  %v3251_v53 = vld [vmem:[%s3096_s22 + $0x74] ss:$8 sps:$4 sm:$0xff]   ;;  %v2804_v56 = vld [vmem:[%s3096_s22 + $0x70] ss:$8 sps:$4 sm:$0xff]  }
  0x30   : > { %2707 = vmatprep.subr.bf16.mxu1 %v3201_v33  ;;  %v2809_v57 = vld [vmem:[%s3096_s22 + $0x84] ss:$8 sps:$4 sm:$0xff]   ;;  %v2807_v60 = vld [vmem:[%s3096_s22 + $0x80] ss:$8 sps:$4 sm:$0xff]   ;;  %v2812_v61 = vld [vmem:[%s3096_s22 + $0x94] ss:$8 sps:$4 sm:$0xff]  }
  0x31   : > { %s4012_s20 = smov (!%p2503_p7, %s680_s20), %s4010_s18  ;;  %v2775_v59 = vld [vmem:[%s3966_s1] sm:$0xff]   ;;  %v2810_v62 = vld [vmem:[%s3096_s22 + $0x90] ss:$8 sps:$4 sm:$0xff]   ;;  %v2776_v0 = vld [vmem:[%s3966_s1 + $0x8] sm:$0xff]   ;;  %s3534_s30 = smov (%p1298_p8), 0  }
  0x32   : > { %s2504_s19 = sshll.u32 %s4012_s20, 7  ;;  %v2815_v63 = vld [vmem:[%s3096_s22 + $0xa4] ss:$8 sps:$4 sm:$0xff]   ;;  %v2813_v1 = vld [vmem:[%s3096_s22 + $0xa0] ss:$8 sps:$4 sm:$0xff]   ;;  %v2777_v5 = vld [vmem:[%s3966_s1 + $0x10] sm:$0xff]  }
  0x33   : > { %s3191_s21 = scalar_lea.vmem [#allocation2], %s2504_s19  ;;  %2723 = vmatpush1.bf16.msra.mxu1 %v3208_v36  ;;  %v2818_v2 = vld [vmem:[%s3096_s22 + $0xb4] ss:$8 sps:$4 sm:$0xff]   ;;  %v2816_v3 = vld [vmem:[%s3096_s22 + $0xb0] ss:$8 sps:$4 sm:$0xff]   ;;  %v2779_v12 = vld [vmem:[%s3966_s1 + $0x20] sm:$0xff]  }
  0x34   : > { %v702_v29 = vld [vmem:[%s3191_s21 + $0x8] sm:$0xff]  ;;  %v701_v30 = vld [vmem:[%s3191_s21] sm:$0xff]  ;;  %v704_v31 = vld [vmem:[%s3191_s21 + $0x18] sm:$0xff]  ;;  %2708 = vmatprep.subr.bf16.mxu1 %v3211_v37 }
  0x35   : > { %781 = vmatprep.subr.bf16.mxu0 %v702_v29  ;;  %v703_v34 = vld [vmem:[%s3191_s21 + $0x10] sm:$0xff]  ;;  %v706_v35 = vld [vmem:[%s3191_s21 + $0x28] sm:$0xff]  ;;  %v705_v38 = vld [vmem:[%s3191_s21 + $0x20] sm:$0xff] }
  0x36   : > { %782 = vmatpush1.bf16.msra.mxu0 %v701_v30  ;;  %v708_v39 = vld [vmem:[%s3191_s21 + $0x38] sm:$0xff]  ;;  %v707_v42 = vld [vmem:[%s3191_s21 + $0x30] sm:$0xff]  ;;  %v710_v43 = vld [vmem:[%s3191_s21 + $0x48] sm:$0xff] }
  0x37   : > { %783 = vmatprep.subr.bf16.mxu0 %v704_v31  ;;  %2724 = vmatpush1.bf16.msra.mxu1 %v3218_v40  ;;  %v709_v46 = vld [vmem:[%s3191_s21 + $0x40] sm:$0xff]  ;;  %v712_v47 = vld [vmem:[%s3191_s21 + $0x58] sm:$0xff]  ;;  %v711_v50 = vld [vmem:[%s3191_s21 + $0x50] sm:$0xff] }
  0x38   : > { %2709 = vmatprep.subr.bf16.mxu1 %v3221_v41  ;;  %v714_v51 = vld [vmem:[%s3191_s21 + $0x68] sm:$0xff]  ;;  %v713_v54 = vld [vmem:[%s3191_s21 + $0x60] sm:$0xff]  ;;  %v716_v55 = vld [vmem:[%s3191_s21 + $0x78] sm:$0xff] }
  0x39   : > { %v715_v58 = vld [vmem:[%s3191_s21 + $0x70] sm:$0xff]  ;;  %v2821_v4 = vld [vmem:[%s3096_s22 + $0xc4] ss:$8 sps:$4 sm:$0xff]   ;;  %v2819_v6 = vld [vmem:[%s3096_s22 + $0xc0] ss:$8 sps:$4 sm:$0xff]  }
  0x3a   : > { %784 = vmatpush1.bf16.msra.mxu0 %v703_v34  ;;  %v2824_v7 = vld [vmem:[%s3096_s22 + $0xd4] ss:$8 sps:$4 sm:$0xff]   ;;  %v2822_v8 = vld [vmem:[%s3096_s22 + $0xd0] ss:$8 sps:$4 sm:$0xff]   ;;  %v2827_v9 = vld [vmem:[%s3096_s22 + $0xe4] ss:$8 sps:$4 sm:$0xff]  }
  0x3b   : > { %785 = vmatprep.subr.bf16.mxu0 %v706_v35  ;;  %2725 = vmatpush1.bf16.msra.mxu1 %v3228_v44  ;;  %v2778_v10 = vld [vmem:[%s3966_s1 + $0x18] sm:$0xff]   ;;  %v2825_v11 = vld [vmem:[%s3096_s22 + $0xe0] ss:$8 sps:$4 sm:$0xff]   ;;  %v2781_v14 = vld [vmem:[%s3966_s1 + $0x30] sm:$0xff]  }
  0x3c   : > { %2710 = vmatprep.subr.bf16.mxu1 %v3231_v45  ;;  %v2780_v13 = vld [vmem:[%s3966_s1 + $0x28] sm:$0xff]   ;;  %v2782_v15 = vld [vmem:[%s3966_s1 + $0x38] sm:$0xff]  }
  0x3d   : > { %v2830_v16 = vld [vmem:[%s3096_s22 + $0xf4] ss:$8 sps:$4 sm:$0xff]   ;;  %v2828_v17 = vld [vmem:[%s3096_s22 + $0xf0] ss:$8 sps:$4 sm:$0xff]   ;;  %s684_s22 = ssub.s32 0, %s2975_s29 }
  0x3e   : > { %786 = vmatpush1.bf16.msra.mxu0 %v705_v38  ;;  %s2505_s26 = smin.u32 %s2975_s29, %s684_s22 }
  0x3f   : > { %787 = vmatprep.subr.bf16.mxu0 %v708_v39  ;;  %2726 = vmatpush1.bf16.msra.mxu1 %v3238_v48  ;;  %s686_s27 = sand.u32 1, %s2505_s26  }
  0x40   : > { %2711 = vmatprep.subr.bf16.mxu1 %v3241_v49  ;;  %s687_s28 = ssub.s32 0, %s686_s27 }
  0x41   : > { %s4014_s28 = smov (!%p683_p9, %s687_s28), %s686_s27 }
  0x42   : > { %788 = vmatpush1.bf16.msra.mxu0 %v707_v42  ;;  %p2507_p10 = scmp.lt.s32.totalorder %s4014_s28, 0  ;;  %s693_s17 = sadd.s32 2, %s4014_s28 }
  0x43   : > { %789 = vmatprep.subr.bf16.mxu0 %v710_v43  ;;  %2727 = vmatpush1.bf16.msra.mxu1 %v3248_v52 }
  0x44   : > { %2712 = vmatprep.subr.bf16.mxu1 %v3251_v53  ;;  %s4016_s17 = smov (!%p2507_p10, %s693_s17), %s4014_s28 }
  0x46   : > { %790 = vmatpush1.bf16.msra.mxu0 %v709_v46 }
  0x47   : > { %791 = vmatprep.subr.bf16.mxu0 %v712_v47  ;;  %2728 = vmatpush1.bf16.msra.mxu1 %v2804_v56 }
  0x48   : > { %2713 = vmatprep.subr.bf16.mxu1 %v2809_v57 }
  0x4a   : > { %792 = vmatpush1.bf16.msra.mxu0 %v711_v50 }
  0x4b   : > { %793 = vmatprep.subr.bf16.mxu0 %v714_v51  ;;  %2729 = vmatpush1.bf16.msra.mxu1 %v2807_v60 }
  0x4c   : > { %2714 = vmatprep.subr.bf16.mxu1 %v2812_v61 }
  0x4e   : > { %794 = vmatpush1.bf16.msra.mxu0 %v713_v54 }
  0x4f   : > { %795 = vmatprep.subr.bf16.mxu0 %v716_v55  ;;  %2730 = vmatpush1.bf16.msra.mxu1 %v2810_v62 }
  0x50   : > { %2715 = vmatprep.subr.bf16.mxu1 %v2815_v63 }
  0x52   : > { %796 = vmatpush1.bf16.msra.mxu0 %v715_v58 }
  0x53   : > { %1114 = vmatprep.subr.bf16.mxu0 %v3181_v26  ;;  %2731 = vmatpush1.bf16.msra.mxu1 %v2813_v1 }
  0x54   : > { %2716 = vmatprep.subr.bf16.mxu1 %v2818_v2 }
  0x55   : > { %814 = vmatmul.mubr.bf16.vlgmr.msra.gmra.mrb[0].mxu0 %v2775_v59 }
  0x56   : > { %823 = vmatprep.mubr.bf16.mxu0 %v2989_v25  ;;  %1115 = vmatpush1.bf16.msra.mxu0 %v3184_v27 }
  0x57   : > { %1116 = vmatprep.subr.bf16.mxu0 %v3187_v28  ;;  %2732 = vmatpush1.bf16.msra.mxu1 %v2816_v3 }
  0x58   : > { %2717 = vmatprep.subr.bf16.mxu1 %v2821_v4 }
  0x5a   : > { %1117 = vmatpush1.bf16.msra.mxu0 %v3198_v32 }
  0x5b   : > { %1118 = vmatprep.subr.bf16.mxu0 %v3201_v33  ;;  %2733 = vmatpush1.bf16.msra.mxu1 %v2819_v6 }
  0x5c   : > { %2718 = vmatprep.subr.bf16.mxu1 %v2824_v7 }
  0x5d   : > { %824 = vmatmul.mubr.bf16.gmra.mrb[4].mxu0 %v2776_v0 }
  0x5e   : > { %833 = vmatprep.mubr.bf16.mxu0 %v2989_v25  ;;  %1119 = vmatpush1.bf16.msra.mxu0 %v3208_v36 }
  0x5f   : > { %1120 = vmatprep.subr.bf16.mxu0 %v3211_v37  ;;  %2734 = vmatpush1.bf16.msra.mxu1 %v2822_v8 }
  0x60   : > { %2719 = vmatprep.subr.bf16.mxu1 %v2827_v9 }
  0x62   : > { %1121 = vmatpush1.bf16.msra.mxu0 %v3218_v40 }
  0x63   : > { %1122 = vmatprep.subr.bf16.mxu0 %v3221_v41  ;;  %2735 = vmatpush1.bf16.msra.mxu1 %v2825_v11 }
  0x64   : > { %2720 = vmatprep.subr.bf16.mxu1 %v2830_v16 }
  0x65   : > { %834 = vmatmul.mubr.bf16.gmra.mrb[8].mxu0 %v2777_v5  ;;  %v942_v5 = vld [vmem:[%s3101_s25] sm:$0x3]  ;;  %s2508_s25 = sshll.u32 %s4016_s17, 7 }
  0x66   : > { %843 = vmatprep.mubr.bf16.mxu0 %v2989_v25  ;;  %1123 = vmatpush1.bf16.msra.mxu0 %v3228_v44  ;;  %s3343_s18 = scalar_lea.vmem [#allocation2], %s2508_s25 }
  0x67   : > { %1124 = vmatprep.subr.bf16.mxu0 %v3231_v45  ;;  %2736 = vmatpush1.bf16.msra.mxu1 %v2828_v17 }
  0x6a   : > { %1125 = vmatpush1.bf16.msra.mxu0 %v3238_v48 }
  0x6b   : > { %1126 = vmatprep.subr.bf16.mxu0 %v3241_v49 }
  0x6d   : > { %844 = vmatmul.mubr.bf16.gmra.mrb[12].mxu0 %v2778_v10 }
  0x6e   : > { %853 = vmatprep.mubr.bf16.mxu0 %v2989_v25  ;;  %1127 = vmatpush1.bf16.msra.mxu0 %v3248_v52 }
  0x6f   : > { %1128 = vmatprep.subr.bf16.mxu0 %v3251_v53 }
  0x72   : > { %1129 = vmatpush1.bf16.msra.mxu0 %v2804_v56 }
  0x73   : > { %1130 = vmatprep.subr.bf16.mxu0 %v2809_v57 }
  0x75   : > { %854 = vmatmul.mubr.bf16.gmra.mrb[16].mxu0 %v2779_v12 }
  0x76   : > { %863 = vmatprep.mubr.bf16.mxu0 %v2989_v25  ;;  %1131 = vmatpush1.bf16.msra.mxu0 %v2807_v60 }
  0x77   : > { %1132 = vmatprep.subr.bf16.mxu0 %v2812_v61 }
  0x7a   : > { %1133 = vmatpush1.bf16.msra.mxu0 %v2810_v62 }
  0x7b   : > { %1134 = vmatprep.subr.bf16.mxu0 %v2815_v63 }
  0x7d   : > { %864 = vmatmul.mubr.bf16.gmra.mrb[20].mxu0 %v2780_v13 }
  0x7e   : > { %873 = vmatprep.mubr.bf16.mxu0 %v2989_v25  ;;  %1135 = vmatpush1.bf16.msra.mxu0 %v2813_v1 }
  0x7f   : > { %1136 = vmatprep.subr.bf16.mxu0 %v2818_v2  ;;  %v944_v2 = vlaneseq }
  0x82   : > { %1137 = vmatpush1.bf16.msra.mxu0 %v2816_v3  ;;  %v3326_v3 = vshrl.u32 %v944_v2, 7 }
  0x83   : > { %1138 = vmatprep.subr.bf16.mxu0 %v2821_v4 }
  0x84   : > { %v3982_v4 = vsub.s32 0, %v3326_v3 }
  0x85   : > { %874 = vmatmul.mubr.bf16.gmra.mrb[24].mxu0 %v2781_v14 }
  0x86   : > { %883 = vmatprep.mubr.bf16.mxu0 %v2989_v25  ;;  %1139 = vmatpush1.bf16.msra.mxu0 %v2819_v6  ;;  %v3981_v6 = vsub.s32 1, %v3326_v3 }
  0x87   : > { %1140 = vmatprep.subr.bf16.mxu0 %v2824_v7  ;;  %v3333_v7 = vrot.slane %v942_v5, %v3982_v4 }
  0x8a   : > { %1141 = vmatpush1.bf16.msra.mxu0 %v2822_v8  ;;  %v3337_v8 = vrot.slane %v942_v5, %v3981_v6 }
  0x8b   : > { %1142 = vmatprep.subr.bf16.mxu0 %v2827_v9 }
  0x8d   : > { %884 = vmatmul.mubr.bf16.gmra.mrb[28].mxu0 %v2782_v15 }
  0x8e   : > { %1143 = vmatpush1.bf16.msra.mxu0 %v2825_v11 }
  0x8f   : > { %1144 = vmatprep.subr.bf16.mxu0 %v2830_v16 }
  0x92   : > { %1145 = vmatpush1.bf16.msra.mxu0 %v2828_v17 }
 0x128   : > { %v815_v18 = vpop.f32.mrb[0].mxu0 }
 0x129   : > { %v817_v19 = vpop.f32.mrb[1].mxu0 }
 0x12a   : > { %v819_v20 = vpop.f32.mrb[2].mxu0 }
 0x12b   : > { %v894_v21 = vpack.c.bf16 %v819_v20, %v815_v18  ;;  %v821_v22 = vpop.f32.mrb[3].mxu0 }
 0x12c   : > { %v895_v23 = vpack.c.bf16 %v821_v22, %v817_v19 }
 0x12e   : > { %1146 = vmatprep.mubr.bf16.mxu0 %v895_v23 }
 0x12f   : > { %1147 = vmatmul.mubr.bf16.vlgmr.msra.gmra.mrb[32].mxu0 %v894_v21 }
 0x130   : > { %v825_v24 = vpop.f32.mrb[4].mxu0 }
 0x131   : > { %v827_v25 = vpop.f32.mrb[5].mxu0 }
 0x132   : > { %v829_v26 = vpop.f32.mrb[6].mxu0 }
 0x133   : > { %v896_v27 = vpack.c.bf16 %v829_v26, %v825_v24  ;;  %v831_v28 = vpop.f32.mrb[7].mxu0 }
 0x134   : > { %v897_v29 = vpack.c.bf16 %v831_v28, %v827_v25 }
 0x136   : > { %1156 = vmatprep.mubr.bf16.mxu0 %v897_v29 }
 0x137   : > { %1157 = vmatmul.mubr.bf16.gmra.mrb[36].mxu0 %v896_v27 }
 0x138   : > { %v835_v30 = vpop.f32.mrb[8].mxu0 }
 0x139   : > { %v837_v31 = vpop.f32.mrb[9].mxu0 }
 0x13a   : > { %v839_v32 = vpop.f32.mrb[10].mxu0 }
 0x13b   : > { %v898_v33 = vpack.c.bf16 %v839_v32, %v835_v30  ;;  %v841_v34 = vpop.f32.mrb[11].mxu0 }
 0x13c   : > { %v899_v35 = vpack.c.bf16 %v841_v34, %v837_v31 }
 0x13e   : > { %1166 = vmatprep.mubr.bf16.mxu1 %v899_v35 }
 0x13f   : > { %1167 = vmatmul.mubr.bf16.vlgmr.msra.gmra.mrb[0].mxu1 %v898_v33 }
 0x140   : > { %v845_v36 = vpop.f32.mrb[12].mxu0 }
 0x141   : > { %v847_v37 = vpop.f32.mrb[13].mxu0 }
 0x142   : > { %v849_v38 = vpop.f32.mrb[14].mxu0 }
 0x143   : > { %v900_v39 = vpack.c.bf16 %v849_v38, %v845_v36  ;;  %v851_v40 = vpop.f32.mrb[15].mxu0 }
 0x144   : > { %v901_v41 = vpack.c.bf16 %v851_v40, %v847_v37 }
 0x146   : > { %1176 = vmatprep.mubr.bf16.mxu1 %v901_v41 }
 0x147   : > { %1177 = vmatmul.mubr.bf16.gmra.mrb[4].mxu1 %v900_v39 }
 0x148   : > { %v855_v42 = vpop.f32.mrb[16].mxu0 }
 0x149   : > { %v857_v43 = vpop.f32.mrb[17].mxu0 }
 0x14a   : > { %v859_v44 = vpop.f32.mrb[18].mxu0 }
 0x14b   : > { %v902_v45 = vpack.c.bf16 %v859_v44, %v855_v42  ;;  %v861_v46 = vpop.f32.mrb[19].mxu0 }
 0x14c   : > { %v903_v47 = vpack.c.bf16 %v861_v46, %v857_v43 }
 0x14e   : > { %1186 = vmatprep.mubr.bf16.mxu1 %v903_v47 }
 0x14f   : > { %1187 = vmatmul.mubr.bf16.gmra.mrb[8].mxu1 %v902_v45 }
 0x150   : > { %v865_v48 = vpop.f32.mrb[20].mxu0 }
 0x151   : > { %v867_v49 = vpop.f32.mrb[21].mxu0 }
 0x152   : > { %v869_v50 = vpop.f32.mrb[22].mxu0 }
 0x153   : > { %v904_v51 = vpack.c.bf16 %v869_v50, %v865_v48  ;;  %v871_v52 = vpop.f32.mrb[23].mxu0 }
 0x154   : > { %v905_v53 = vpack.c.bf16 %v871_v52, %v867_v49 }
 0x156   : > { %1196 = vmatprep.mubr.bf16.mxu1 %v905_v53 }
 0x157   : > { %1197 = vmatmul.mubr.bf16.gmra.mrb[12].mxu1 %v904_v51 }
 0x158   : > { %v875_v54 = vpop.f32.mrb[24].mxu0 }
 0x159   : > { %v877_v55 = vpop.f32.mrb[25].mxu0 }
 0x15a   : > { %v879_v56 = vpop.f32.mrb[26].mxu0 }
 0x15b   : > { %v906_v57 = vpack.c.bf16 %v879_v56, %v875_v54  ;;  %v881_v58 = vpop.f32.mrb[27].mxu0 }
 0x15c   : > { %v907_v59 = vpack.c.bf16 %v881_v58, %v877_v55 }
 0x15e   : > { %1206 = vmatprep.mubr.bf16.mxu1 %v907_v59 }
 0x15f   : > { %1207 = vmatmul.mubr.bf16.gmra.mrb[16].mxu1 %v906_v57 }
 0x160   : > { %v885_v60 = vpop.f32.mrb[28].mxu0 }
 0x161   : > { %v887_v61 = vpop.f32.mrb[29].mxu0 }
 0x162   : > { %v889_v62 = vpop.f32.mrb[30].mxu0 }
 0x163   : > { %v908_v63 = vpack.c.bf16 %v889_v62, %v885_v60  ;;  %v891_v0 = vpop.f32.mrb[31].mxu0 }
 0x164   : > { %v909_v1 = vpack.c.bf16 %v891_v0, %v887_v61 }
 0x166   : > { %1216 = vmatprep.mubr.bf16.mxu1 %v909_v1 }
 0x167   : > { %1217 = vmatmul.mubr.bf16.gmra.mrb[20].mxu1 %v908_v63 }
 0x202   : > { %v1148_v9 = vpop.f32.mrb[32].mxu0 }
 0x203   : > { %v1149_v10 = vadd.f32 %v1148_v9, %v3333_v7  ;;  %v1150_v11 = vpop.f32.mrb[33].mxu0 }
 0x204   : > { %v1151_v12 = vadd.f32 %v1150_v11, %v3337_v8  ;;  %v1152_v13 = vpop.f32.mrb[34].mxu0 }
 0x205   : > { %v1153_v14 = vadd.f32 %v1152_v13, %v3333_v7  ;;  %v1154_v15 = vpop.f32.mrb[35].mxu0  ;;  %v1227_v17 = vmax.f32 %v1149_v10, 0.0 }
 0x206   : > { %v1155_v16 = vadd.f32 %v1154_v15, %v3337_v8  ;;  %v1228_v19 = vmax.f32 %v1151_v12, 0.0 }
 0x207   : > { %v1229_v18 = vmax.f32 %v1153_v14, 0.0 }
 0x208   : > { %v1230_v20 = vmax.f32 %v1155_v16, 0.0 }
 0x209   : > { %v1261_v21 = vpack.c.bf16 %v1229_v18, %v1227_v17 }
 0x20a   : > { %v1262_v22 = vpack.c.bf16 %v1230_v20, %v1228_v19  ;;  %v1158_v23 = vpop.f32.mrb[36].mxu0 }
 0x20b   : > { %1282 = vst [vmem:[%s3343_s18] sm:$0xff] %v1261_v21  ;;  %v1159_v24 = vadd.f32 %v1158_v23, %v3333_v7  ;;  %v1160_v25 = vpop.f32.mrb[37].mxu0 }
 0x20c   : > { %1283 = vst [vmem:[%s3343_s18 + $0x8] sm:$0xff] %v1262_v22  ;;  %v1161_v26 = vadd.f32 %v1160_v25, %v3337_v8  ;;  %v1162_v27 = vpop.f32.mrb[38].mxu0 }
 0x20d   : > { %v1163_v28 = vadd.f32 %v1162_v27, %v3333_v7  ;;  %v1164_v29 = vpop.f32.mrb[39].mxu0  ;;  %v1231_v31 = vmax.f32 %v1159_v24, 0.0 }
 0x20e   : > { %v1165_v30 = vadd.f32 %v1164_v29, %v3337_v8  ;;  %v1232_v33 = vmax.f32 %v1161_v26, 0.0 }
 0x20f   : > { %v1233_v32 = vmax.f32 %v1163_v28, 0.0 }
 0x210   : > { %v1234_v34 = vmax.f32 %v1165_v30, 0.0 }
 0x211   : > { %v1263_v35 = vpack.c.bf16 %v1233_v32, %v1231_v31 }
 0x212   : > { %v1264_v36 = vpack.c.bf16 %v1234_v34, %v1232_v33  ;;  %v1168_v37 = vpop.f32.mrb[0].mxu1 }
 0x213   : > { %1284 = vst [vmem:[%s3343_s18 + $0x10] sm:$0xff] %v1263_v35  ;;  %v1169_v38 = vadd.f32 %v1168_v37, %v3333_v7  ;;  %v1170_v39 = vpop.f32.mrb[1].mxu1 }
 0x214   : > { %1285 = vst [vmem:[%s3343_s18 + $0x18] sm:$0xff] %v1264_v36  ;;  %v1171_v40 = vadd.f32 %v1170_v39, %v3337_v8  ;;  %v1172_v41 = vpop.f32.mrb[2].mxu1 }
 0x215   : > { %v1173_v42 = vadd.f32 %v1172_v41, %v3333_v7  ;;  %v1174_v43 = vpop.f32.mrb[3].mxu1  ;;  %v1235_v45 = vmax.f32 %v1169_v38, 0.0 }
 0x216   : > { %v1175_v44 = vadd.f32 %v1174_v43, %v3337_v8  ;;  %v1236_v47 = vmax.f32 %v1171_v40, 0.0 }
 0x217   : > { %v1237_v46 = vmax.f32 %v1173_v42, 0.0 }
 0x218   : > { %v1238_v48 = vmax.f32 %v1175_v44, 0.0 }
 0x219   : > { %v1265_v49 = vpack.c.bf16 %v1237_v46, %v1235_v45 }
 0x21a   : > { %v1266_v50 = vpack.c.bf16 %v1238_v48, %v1236_v47  ;;  %v1178_v51 = vpop.f32.mrb[4].mxu1 }
 0x21b   : > { %1286 = vst [vmem:[%s3343_s18 + $0x20] sm:$0xff] %v1265_v49  ;;  %v1179_v52 = vadd.f32 %v1178_v51, %v3333_v7  ;;  %v1180_v53 = vpop.f32.mrb[5].mxu1 }
 0x21c   : > { %1287 = vst [vmem:[%s3343_s18 + $0x28] sm:$0xff] %v1266_v50  ;;  %v1181_v54 = vadd.f32 %v1180_v53, %v3337_v8  ;;  %v1182_v55 = vpop.f32.mrb[6].mxu1 }
 0x21d   : > { %v1183_v56 = vadd.f32 %v1182_v55, %v3333_v7  ;;  %v1184_v57 = vpop.f32.mrb[7].mxu1  ;;  %v1239_v59 = vmax.f32 %v1179_v52, 0.0 }
 0x21e   : > { %v1185_v58 = vadd.f32 %v1184_v57, %v3337_v8  ;;  %v1240_v61 = vmax.f32 %v1181_v54, 0.0 }
 0x21f   : > { %v1241_v60 = vmax.f32 %v1183_v56, 0.0 }
 0x220   : > { %v1242_v62 = vmax.f32 %v1185_v58, 0.0 }
 0x221   : > { %v1267_v63 = vpack.c.bf16 %v1241_v60, %v1239_v59 }
 0x222   : > { %v1268_v0 = vpack.c.bf16 %v1242_v62, %v1240_v61  ;;  %v1188_v1 = vpop.f32.mrb[8].mxu1 }
 0x223   : > { %1288 = vst [vmem:[%s3343_s18 + $0x30] sm:$0xff] %v1267_v63  ;;  %v1189_v5 = vadd.f32 %v1188_v1, %v3333_v7  ;;  %v1190_v9 = vpop.f32.mrb[9].mxu1 }
 0x224   : > { %1289 = vst [vmem:[%s3343_s18 + $0x38] sm:$0xff] %v1268_v0  ;;  %v1191_v10 = vadd.f32 %v1190_v9, %v3337_v8  ;;  %v1192_v11 = vpop.f32.mrb[10].mxu1  ;;  %v3409_v9 = vld [vmem:[%s3971_s6] sm:$0xff] (%p1298_p8) }
 0x225   : > { %v1193_v12 = vadd.f32 %v1192_v11, %v3333_v7  ;;  %v1194_v13 = vpop.f32.mrb[11].mxu1  ;;  %v1243_v15 = vmax.f32 %v1189_v5, 0.0 }
 0x226   : > { %v1195_v14 = vadd.f32 %v1194_v13, %v3337_v8  ;;  %v1244_v17 = vmax.f32 %v1191_v10, 0.0 }
 0x227   : > { %v1245_v16 = vmax.f32 %v1193_v12, 0.0 }
 0x228   : > { %v1246_v18 = vmax.f32 %v1195_v14, 0.0 }
 0x229   : > { %v1269_v19 = vpack.c.bf16 %v1245_v16, %v1243_v15 }
 0x22a   : > { %v1270_v20 = vpack.c.bf16 %v1246_v18, %v1244_v17  ;;  %v1198_v21 = vpop.f32.mrb[12].mxu1 }
 0x22b   : > { %1290 = vst [vmem:[%s3343_s18 + $0x40] sm:$0xff] %v1269_v19  ;;  %v1199_v22 = vadd.f32 %v1198_v21, %v3333_v7  ;;  %v1200_v23 = vpop.f32.mrb[13].mxu1  ;;  %v1319_v21 = vld [vmem:[%s3969_s4] sm:$0xf] (%p1298_p8) }
 0x22c   : > { %1291 = vst [vmem:[%s3343_s18 + $0x48] sm:$0xff] %v1270_v20  ;;  %v1201_v24 = vadd.f32 %v1200_v23, %v3337_v8  ;;  %v1202_v25 = vpop.f32.mrb[14].mxu1  ;;  %v3458_v23 = vld [vmem:[%s3970_s5 + $0x8] sm:$0xff] (%p1298_p8) }
 0x22d   : > { %v1203_v26 = vadd.f32 %v1202_v25, %v3333_v7  ;;  %v1204_v27 = vpop.f32.mrb[15].mxu1  ;;  %v1247_v29 = vmax.f32 %v1199_v22, 0.0  ;;  %v3453_v22 = vld [vmem:[%s3970_s5] sm:$0xff] (%p1298_p8)  ;;  %v3468_v25 = vld [vmem:[%s3970_s5 + $0x18] sm:$0xff] (%p1298_p8) }
 0x22e   : > { %v1205_v28 = vadd.f32 %v1204_v27, %v3337_v8  ;;  %v1248_v31 = vmax.f32 %v1201_v24, 0.0  ;;  %v3463_v24 = vld [vmem:[%s3970_s5 + $0x10] sm:$0xff] (%p1298_p8)  ;;  %v3478_v27 = vld [vmem:[%s3970_s5 + $0x28] sm:$0xff] (%p1298_p8) }
 0x22f   : > { %v1249_v30 = vmax.f32 %v1203_v26, 0.0  ;;  %v3473_v26 = vld [vmem:[%s3970_s5 + $0x20] sm:$0xff] (%p1298_p8) }
 0x230   : > { %v1250_v32 = vmax.f32 %v1205_v28, 0.0  ;;  %v3483_v28 = vld [vmem:[%s3970_s5 + $0x30] sm:$0xff] (%p1298_p8) }
 0x231   : > { %v1271_v33 = vpack.c.bf16 %v1249_v30, %v1247_v29  ;;  %v3488_v29 = vld [vmem:[%s3970_s5 + $0x38] sm:$0xff] (%p1298_p8)  ;;  %v3493_v30 = vld [vmem:[%s3970_s5 + $0x40] sm:$0xff] (%p1298_p8) }
 0x232   : > { %v1272_v34 = vpack.c.bf16 %v1250_v32, %v1248_v31  ;;  %v1208_v35 = vpop.f32.mrb[16].mxu1  ;;  %v3498_v31 = vld [vmem:[%s3970_s5 + $0x48] sm:$0xff] (%p1298_p8)  ;;  %v3503_v32 = vld [vmem:[%s3970_s5 + $0x50] sm:$0xff] (%p1298_p8) }
 0x233   : > { %1292 = vst [vmem:[%s3343_s18 + $0x50] sm:$0xff] %v1271_v33  ;;  %v1209_v36 = vadd.f32 %v1208_v35, %v3333_v7  ;;  %v1210_v37 = vpop.f32.mrb[17].mxu1  ;;  %v3508_v33 = vld [vmem:[%s3970_s5 + $0x58] sm:$0xff] (%p1298_p8)  ;;  %v3518_v35 = vld [vmem:[%s3970_s5 + $0x68] sm:$0xff] (%p1298_p8) }
 0x234   : > { %1293 = vst [vmem:[%s3343_s18 + $0x58] sm:$0xff] %v1272_v34  ;;  %v1211_v38 = vadd.f32 %v1210_v37, %v3337_v8  ;;  %v1212_v39 = vpop.f32.mrb[18].mxu1  ;;  %v3513_v34 = vld [vmem:[%s3970_s5 + $0x60] sm:$0xff] (%p1298_p8)  ;;  %v3528_v37 = vld [vmem:[%s3970_s5 + $0x78] sm:$0xff] (%p1298_p8) }
 0x235   : > { %v1213_v40 = vadd.f32 %v1212_v39, %v3333_v7  ;;  %v1214_v41 = vpop.f32.mrb[19].mxu1  ;;  %v1251_v43 = vmax.f32 %v1209_v36, 0.0  ;;  %v3523_v36 = vld [vmem:[%s3970_s5 + $0x70] sm:$0xff] (%p1298_p8) }
 0x236   : > { %v1215_v42 = vadd.f32 %v1214_v41, %v3337_v8  ;;  %v1252_v45 = vmax.f32 %v1211_v38, 0.0 }
 0x237   : > { %v1253_v44 = vmax.f32 %v1213_v40, 0.0 }
 0x238   : > { %v1254_v46 = vmax.f32 %v1215_v42, 0.0 }
 0x239   : > { %v1273_v47 = vpack.c.bf16 %v1253_v44, %v1251_v43 }
 0x23a   : > { %v1274_v48 = vpack.c.bf16 %v1254_v46, %v1252_v45  ;;  %v1218_v49 = vpop.f32.mrb[20].mxu1 }
 0x23b   : > { %1294 = vst [vmem:[%s3343_s18 + $0x60] sm:$0xff] %v1273_v47  ;;  %v1219_v50 = vadd.f32 %v1218_v49, %v3333_v7  ;;  %v1220_v51 = vpop.f32.mrb[21].mxu1 }
 0x23c   : > { %1295 = vst [vmem:[%s3343_s18 + $0x68] sm:$0xff] %v1274_v48  ;;  %v1221_v52 = vadd.f32 %v1220_v51, %v3337_v8  ;;  %v1222_v53 = vpop.f32.mrb[22].mxu1 }
 0x23d   : > { %v1223_v54 = vadd.f32 %v1222_v53, %v3333_v7  ;;  %v1224_v55 = vpop.f32.mrb[23].mxu1  ;;  %v1255_v57 = vmax.f32 %v1219_v50, 0.0  ;;  %v2990_v7 = vmov (%p1298_p8), 0  }
 0x23e   : > { %v1225_v56 = vadd.f32 %v1224_v55, %v3337_v8  ;;  %v1256_v59 = vmax.f32 %v1221_v52, 0.0  ;;  %1302 = sbr.rel (!%p1298_p8) target bundleno = 1828 (0x724), region = 118  ;;  %1353 = vmatprep.mubr.bf16.mxu0 (%p1298_p8), %v2990_v7  ;;  %2831 = vset.pattern.permute.xlu0 (%p1298_p8), %v2990_v7 }
 0x23f   : > { %v1257_v58 = vmax.f32 %v1223_v54, 0.0  ;;  %1364 = vperm.xlu0 (%p1298_p8), %2831, %v3409_v9  }
 0x240   : > { %v1258_v60 = vmax.f32 %v1225_v56, 0.0 }
 0x241   : > { %v1275_v61 = vpack.c.bf16 %v1257_v58, %v1255_v57 }
 0x242   : > { %v1276_v62 = vpack.c.bf16 %v1258_v60, %v1256_v59 }
 0x243   : > { %1296 = vst [vmem:[%s3343_s18 + $0x70] sm:$0xff] %v1275_v61 }
 0x244   : > { %1297 = vst [vmem:[%s3343_s18 + $0x78] sm:$0xff] %v1276_v62 }
 0x24b   : > { %v3391_v63 = vld [vmem:[#allocation2 + $0x8] sm:$0xff]  ;;  %v3393_v0 = vld [vmem:[#allocation2] sm:$0xff]  ;;  %v3395_v1 = vld [vmem:[#allocation2 + $0x18] sm:$0xff] }
 0x24c   : > { %1321 = vmatprep.subr.bf16.mxu0 %v3391_v63  ;;  %v3402_v8 = vld [vmem:[#allocation2 + $0x10] sm:$0xff]  ;;  %v3404_v5 = vld [vmem:[#allocation2 + $0x28] sm:$0xff]  ;;  %v3414_v10 = vld [vmem:[#allocation2 + $0x20] sm:$0xff] }
 0x24d   : > { %1322 = vmatpush1.bf16.msra.mxu0 %v3393_v0  ;;  %v3416_v11 = vld [vmem:[#allocation2 + $0x38] sm:$0xff]  ;;  %v3420_v12 = vld [vmem:[#allocation2 + $0x30] sm:$0xff]  ;;  %v3422_v13 = vld [vmem:[#allocation2 + $0x48] sm:$0xff] }
 0x24e   : > { %1323 = vmatprep.subr.bf16.mxu0 %v3395_v1  ;;  %v3426_v14 = vld [vmem:[#allocation2 + $0x40] sm:$0xff]  ;;  %v3428_v15 = vld [vmem:[#allocation2 + $0x58] sm:$0xff]  ;;  %v3432_v16 = vld [vmem:[#allocation2 + $0x50] sm:$0xff] }
 0x24f   : > { %v3434_v17 = vld [vmem:[#allocation2 + $0x68] sm:$0xff]  ;;  %v3438_v18 = vld [vmem:[#allocation2 + $0x60] sm:$0xff]  ;;  %v3440_v19 = vld [vmem:[#allocation2 + $0x78] sm:$0xff] }
 0x250   : > { %v3444_v20 = vld [vmem:[#allocation2 + $0x70] sm:$0xff] }
 0x251   : > { %1324 = vmatpush1.bf16.msra.mxu0 %v3402_v8 }
 0x252   : > { %1325 = vmatprep.subr.bf16.mxu0 %v3404_v5 }
 0x255   : > { %1326 = vmatpush1.bf16.msra.mxu0 %v3414_v10 }
 0x256   : > { %1327 = vmatprep.subr.bf16.mxu0 %v3416_v11 }
 0x259   : > { %1328 = vmatpush1.bf16.msra.mxu0 %v3420_v12 }
 0x25a   : > { %1329 = vmatprep.subr.bf16.mxu0 %v3422_v13 }
 0x25d   : > { %1330 = vmatpush1.bf16.msra.mxu0 %v3426_v14 }
 0x25e   : > { %1331 = vmatprep.subr.bf16.mxu0 %v3428_v15 }
 0x261   : > { %1332 = vmatpush1.bf16.msra.mxu0 %v3432_v16 }
 0x262   : > { %1333 = vmatprep.subr.bf16.mxu0 %v3434_v17 }
 0x265   : > { %1334 = vmatpush1.bf16.msra.mxu0 %v3438_v18 }
 0x266   : > { %1335 = vmatprep.subr.bf16.mxu0 %v3440_v19 }
 0x269   : > { %1336 = vmatpush1.bf16.msra.mxu0 %v3444_v20 }
 0x26c   : > { %1354 = vmatmul.mubr.bf16.vlgmr.msra.gmra.mrb[0].mxu0 %v1319_v21 }
 0x2be   : > { %v1365_v38 = vpop.permute.xlu0 %1364 }
 0x33f   : > { %v1355_v39 = vpop.f32.mrb[0].mxu0 }
 0x340   : > { %v3530_v40 = vmul.f32 %v1365_v38, %v1355_v39  ;;  %v1357_v41 = vpop.f32.mrb[1].mxu0 }
 0x341   : > { %v3532_v42 = vmul.f32 %v1365_v38, %v1357_v41  ;;  %v1359_v43 = vpop.f32.mrb[2].mxu0 }
 0x342   : > { %v1360_v44 = vpop.f32.mrb[3].mxu0 }
 0x343 LB: >> { %v2991_v45 = vmov 0   ;;  %v1391_v46 = vstv %s2987_s30  ;;  %s1626_s16 = sshra.s32 %s2987_s30, 3  ;;  %s1629_s22 = sand.u32 7, %s2987_s30  ;;  %s2987_s30 = sphi %s3534_s30, %s1390_s30  }
 0x344   : >> { %2833 = vset.pattern.permute.xlu1 %v2991_v45  ;;  %2832 = vset.pattern.permute.xlu0 %v2991_v45  ;;  %vm1394_vm0 = vcmp.eq.s32.totalorder %v3463_v24, %v1391_v46  ;;  %vm1392_vm1 = vcmp.eq.s32.totalorder %v3453_v22, %v1391_v46  ;;  %vm1395_vm2 = vcmp.eq.s32.totalorder %v3468_v25, %v1391_v46  ;;  %s2665_s26 = sshll.u32 %s1626_s16, 4  ;;  %s1390_s30 = sadd.s32 1, %s2987_s30  }
 0x345   : >> { %vm1393_vm3 = vcmp.eq.s32.totalorder %v3458_v23, %v1391_v46  ;;  %v1410_v47 = vsel %vm1394_vm0, 1, %v2991_v45  ;;  %v1408_v48 = vsel %vm1392_vm1, 1, %v2991_v45  ;;  %v1411_v49 = vsel %vm1395_vm2, 1, %v2991_v45  ;;  %s1632_s27 = sadd.s32 %s2665_s26, %s1629_s22  ;;  %p1387_p11 = scmp.ge.s32.totalorder %s1390_s30, 8  }
 0x346   : >> { %1431 = vperm.xlu1 %2833, %v1410_v47   ;;  %1425 = vperm.xlu0 %2832, %v1408_v48   ;;  %v1409_v50 = vsel %vm1393_vm3, 1, %v2991_v45  ;;  %vm1397_vm4 = vcmp.eq.s32.totalorder %v3478_v27, %v1391_v46  ;;  %vm1396_vm5 = vcmp.eq.s32.totalorder %v3473_v26, %v1391_v46  ;;  %vm1399_vm6 = vcmp.eq.s32.totalorder %v3488_v29, %v1391_v46  ;;  %s1633_s28 = scalar_lea.vmem [#allocation3], %s1632_s27  ;;  %v2868_v22 = vld [vmem:[%s3973_s8 + $0x54] ss:$8 sps:$4 sm:$0xff] (%p1387_p11)   ;;  %v2867_v23 = vld [vmem:[%s3972_s7 + $0x50] ss:$8 sps:$4 sm:$0xff] (%p1387_p11)  }
 0x347   : >> { %v1413_v51 = vsel %vm1397_vm4, 1, %v2991_v45  ;;  %v1412_v52 = vsel %vm1396_vm5, 1, %v2991_v45  ;;  %vm1398_vm7 = vcmp.eq.s32.totalorder %v3483_v28, %v1391_v46  ;;  %v1415_v53 = vsel %vm1399_vm6, 1, %v2991_v45  ;;  %v2871_v24 = vld [vmem:[%s3972_s7 + $0x64] ss:$8 sps:$4 sm:$0xff] (%p1387_p11)  }
 0x348   : >> { %v1414_v54 = vsel %vm1398_vm7, 1, %v2991_v45  ;;  %vm1401_vm8 = vcmp.eq.s32.totalorder %v3498_v31, %v1391_v46  ;;  %vm1400_vm9 = vcmp.eq.s32.totalorder %v3493_v30, %v1391_v46  ;;  %vm1403_vm10 = vcmp.eq.s32.totalorder %v3508_v33, %v1391_v46  ;;  %v2870_v25 = vld [vmem:[%s3973_s8 + $0x50] ss:$8 sps:$4 sm:$0xff] (%p1387_p11)   ;;  %v2874_v26 = vld [vmem:[%s3973_s8 + $0x64] ss:$8 sps:$4 sm:$0xff] (%p1387_p11)  }
 0x349   : >> { %v1417_v55 = vsel %vm1401_vm8, 1, %v2991_v45  ;;  %v1416_v56 = vsel %vm1400_vm9, 1, %v2991_v45  ;;  %vm1402_vm11 = vcmp.eq.s32.totalorder %v3503_v32, %v1391_v46  ;;  %v1419_v57 = vsel %vm1403_vm10, 1, %v2991_v45  ;;  %v2873_v27 = vld [vmem:[%s3972_s7 + $0x60] ss:$8 sps:$4 sm:$0xff] (%p1387_p11)  }
 0x34a   : >> { %1434 = vperm.xlu1 %2833, %v1411_v49   ;;  %1428 = vperm.xlu0 %2832, %v1409_v50   ;;  %v1418_v58 = vsel %vm1402_vm11, 1, %v2991_v45  ;;  %vm1405_vm12 = vcmp.eq.s32.totalorder %v3518_v35, %v1391_v46  ;;  %vm1404_vm13 = vcmp.eq.s32.totalorder %v3513_v34, %v1391_v46  ;;  %vm1407_vm14 = vcmp.eq.s32.totalorder %v3528_v37, %v1391_v46  ;;  %v2877_v28 = vld [vmem:[%s3972_s7 + $0x74] ss:$8 sps:$4 sm:$0xff] (%p1387_p11)   ;;  %v2876_v29 = vld [vmem:[%s3973_s8 + $0x60] ss:$8 sps:$4 sm:$0xff] (%p1387_p11)  }
 0x34b   : >> { %v1421_v59 = vsel %vm1405_vm12, 1, %v2991_v45  ;;  %v1420_v60 = vsel %vm1404_vm13, 1, %v2991_v45  ;;  %vm1406_vm15 = vcmp.eq.s32.totalorder %v3523_v36, %v1391_v46  ;;  %v1423_v61 = vsel %vm1407_vm14, 1, %v2991_v45  ;;  %v2880_v30 = vld [vmem:[%s3973_s8 + $0x74] ss:$8 sps:$4 sm:$0xff] (%p1387_p11)  }
 0x34c   : >> { %v1422_v62 = vsel %vm1406_vm15, 1, %v2991_v45  ;;  %v2879_v31 = vld [vmem:[%s3972_s7 + $0x70] ss:$8 sps:$4 sm:$0xff] (%p1387_p11)   ;;  %v2883_v32 = vld [vmem:[%s3972_s7 + $0x84] ss:$8 sps:$4 sm:$0xff] (%p1387_p11)  }
 0x34d   : > { %v2882_v33 = vld [vmem:[%s3973_s8 + $0x70] ss:$8 sps:$4 sm:$0xff] (%p1387_p11)   ;;  %v2886_v34 = vld [vmem:[%s3973_s8 + $0x84] ss:$8 sps:$4 sm:$0xff] (%p1387_p11)   ;;  %v2885_v35 = vld [vmem:[%s3972_s7 + $0x80] ss:$8 sps:$4 sm:$0xff] (%p1387_p11)  }
 0x34e   : >> { %1440 = vperm.xlu1 %2833, %v1413_v51   ;;  %1437 = vperm.xlu0 %2832, %v1412_v52   ;;  %v2889_v36 = vld [vmem:[%s3972_s7 + $0x94] ss:$8 sps:$4 sm:$0xff] (%p1387_p11)   ;;  %v2888_v37 = vld [vmem:[%s3973_s8 + $0x80] ss:$8 sps:$4 sm:$0xff] (%p1387_p11)  }
 0x352   : >> { %1446 = vperm.xlu1 %2833, %v1415_v53   ;;  %1443 = vperm.xlu0 %2832, %v1414_v54  }
 0x356   : >> { %1452 = vperm.xlu1 %2833, %v1417_v55   ;;  %1449 = vperm.xlu0 %2832, %v1416_v56  }
 0x35a   : >> { %1458 = vperm.xlu1 %2833, %v1419_v57   ;;  %1455 = vperm.xlu0 %2832, %v1418_v58  }
 0x35e   : >> { %1464 = vperm.xlu1 %2833, %v1421_v59   ;;  %1461 = vperm.xlu0 %2832, %v1420_v60  }
 0x362   : >> { %1470 = vperm.xlu1 %2833, %v1423_v61   ;;  %1467 = vperm.xlu0 %2832, %v1422_v62  }
 0x366   : > { %2834 = vset.pattern.permute.xlu0 (%p1387_p11), %v2990_v7 }
 0x3c5   : >> { %v1432_v21 = vpop.permute.xlu1 %1431  ;;  %v1426_v38 = vpop.permute.xlu0 %1425 }
 0x3c6   : >> { %vm1474_vm0 = vcmp.eq.s32.totalorder %v1432_v21, 1  ;;  %vm1472_vm1 = vcmp.eq.s32.totalorder %v1426_v38, 1 }
 0x3c7   : >> { %vm3574_vm3 = vmpackc.low %vm1474_vm0, %vm1474_vm0 }
 0x3c8   : >> { %vm3578_vm5 = vmpackc.low %vm1472_vm1, %vm1472_vm1  ;;  %v1506_v54 = vsel %vm3574_vm3, 65537, %v2991_v45 }
 0x3c9   : >> { %v1435_v39 = vpop.permute.xlu1 %1434  ;;  %v1429_v41 = vpop.permute.xlu0 %1428  ;;  %v1504_v57 = vsel %vm3578_vm5, 65537, %v2991_v45 }
 0x3ca   : >> { %vm1475_vm2 = vcmp.eq.s32.totalorder %v1435_v39, 1  ;;  %vm1473_vm4 = vcmp.eq.s32.totalorder %v1429_v41, 1 }
 0x3cb   : >> { %vm1491_vm7 = vmpackc.low %vm1475_vm2, %vm1475_vm2 }
 0x3cc   : >> { %vm1489_vm9 = vmpackc.low %vm1473_vm4, %vm1473_vm4  ;;  %v1507_v50 = vsel %vm1491_vm7, 65537, %v2991_v45 }
 0x3cd   : >> { %v1441_v43 = vpop.permute.xlu1 %1440  ;;  %v1438_v44 = vpop.permute.xlu0 %1437  ;;  %v1505_v53 = vsel %vm1489_vm9, 65537, %v2991_v45  ;;  %v2555_v58 = vcombine.low %v1506_v54, %v1507_v50 }
 0x3ce   : >> { %vm1477_vm6 = vcmp.eq.s32.totalorder %v1441_v43, 1  ;;  %vm1476_vm8 = vcmp.eq.s32.totalorder %v1438_v44, 1  ;;  %v2554_v59 = vcombine.low %v1504_v57, %v1505_v53 }
 0x3cf   : >> { %vm1493_vm11 = vmpackc.low %vm1477_vm6, %vm1477_vm6 }
 0x3d0   : >> { %vm1492_vm13 = vmpackc.low %vm1476_vm8, %vm1476_vm8  ;;  %v1509_v55 = vsel %vm1493_vm11, 65537, %v2991_v45  ;;  %vm3596_vm8 = vcmp.ne.s16.totalorder %v2555_v58, 0  ;;  %vm3601_vm9 = vcmp.ne.s16.totalorder %v2554_v59, 0 }
 0x3d1   : >> { %v1447_v48 = vpop.permute.xlu1 %1446  ;;  %v1444_v49 = vpop.permute.xlu0 %1443  ;;  %v1508_v56 = vsel %vm1492_vm13, 65537, %v2991_v45  ;;  %v1554_v54 = vsel %vm3596_vm8, %v3402_v8, 4286578559  ;;  %v1553_v59 = vsel %vm3601_vm9, %v3391_v63, 4286578559 }
 0x3d2   : >> { %vm1479_vm10 = vcmp.eq.s32.totalorder %v1447_v48, 1  ;;  %vm1478_vm12 = vcmp.eq.s32.totalorder %v1444_v49, 1  ;;  %v2556_v38 = vcombine.low %v1508_v56, %v1509_v55  ;;  %v1555_v55 = vsel %vm3596_vm8, %v3395_v1, 4286578559  ;;  %v2840_v63 = vld [vmem:[%s3973_s8] ss:$8 sps:$4 sm:$0xff] (%p1387_p11)  }
 0x3d3   : >> { %vm1495_vm14 = vmpackc.low %vm1479_vm10, %vm1479_vm10  ;;  %v1552_v56 = vsel %vm3601_vm9, %v3393_v0, 4286578559  ;;  %vm1636_vm9 = vcmp.gt.f32.partialorder (%p1387_p11), %v3409_v9, 0.0  ;;  %v2841_v0 = vld [vmem:[%s3972_s7 + $0x14] ss:$8 sps:$4 sm:$0xff] (%p1387_p11)  }
 0x3d4   : >> { %vm1494_vm15 = vmpackc.low %vm1478_vm12, %vm1478_vm12  ;;  %v1511_v60 = vsel %vm1495_vm14, 65537, %v2991_v45  ;;  %vm3606_vm10 = vcmp.ne.s16.totalorder %v2556_v38, 0  ;;  %v2843_v1 = vld [vmem:[%s3972_s7 + $0x10] ss:$8 sps:$4 sm:$0xff] (%p1387_p11)   ;;  %v2849_v9 = vld [vmem:[%s3972_s7 + $0x20] ss:$8 sps:$4 sm:$0xff] (%p1387_p11)  }
 0x3d5   : >> { %v1453_v51 = vpop.permute.xlu1 %1452  ;;  %v1450_v52 = vpop.permute.xlu0 %1449  ;;  %v1510_v61 = vsel %vm1494_vm15, 65537, %v2991_v45  ;;  %v2846_v8 = vld [vmem:[%s3973_s8 + $0x10] ss:$8 sps:$4 sm:$0xff] (%p1387_p11)  }
 0x3d6   : >> { %vm1481_vm0 = vcmp.eq.s32.totalorder %v1453_v51, 1  ;;  %vm1480_vm2 = vcmp.eq.s32.totalorder %v1450_v52, 1  ;;  %v2557_v44 = vcombine.low %v1510_v61, %v1511_v60  ;;  %v1556_v60 = vsel %vm3606_vm10, %v3414_v10, 4286578559  ;;  %v2850_v10 = vld [vmem:[%s3973_s8 + $0x24] ss:$8 sps:$4 sm:$0xff] (%p1387_p11)  }
 0x3d7   : >> { %vm1497_vm1 = vmpackc.low %vm1481_vm0, %vm1481_vm0 }
 0x3d8   : >> { %vm1496_vm4 = vmpackc.low %vm1480_vm2, %vm1480_vm2  ;;  %v1513_v39 = vsel %vm1497_vm1, 65537, %v2991_v45  ;;  %vm3619_vm14 = vcmp.ne.s16.totalorder %v2557_v44, 0 }
 0x3d9   : >> { %v1459_v62 = vpop.permute.xlu1 %1458  ;;  %v1456_v21 = vpop.permute.xlu0 %1455  ;;  %v1512_v41 = vsel %vm1496_vm4, 65537, %v2991_v45  ;;  %v1558_v44 = vsel %vm3619_vm14, %v3420_v12, 4286578559  ;;  %v2852_v12 = vld [vmem:[%s3973_s8 + $0x20] ss:$8 sps:$4 sm:$0xff] (%p1387_p11)  }
 0x3da   : >> { %vm1483_vm3 = vcmp.eq.s32.totalorder %v1459_v62, 1  ;;  %vm1482_vm7 = vcmp.eq.s32.totalorder %v1456_v21, 1  ;;  %v2558_v48 = vcombine.low %v1512_v41, %v1513_v39  ;;  %v1557_v39 = vsel %vm3606_vm10, %v3404_v5, 4286578559  ;;  %v2847_v5 = vld [vmem:[%s3972_s7 + $0x24] ss:$8 sps:$4 sm:$0xff] (%p1387_p11)  }
 0x3db   : >> { %vm1499_vm6 = vmpackc.low %vm1483_vm3, %vm1483_vm3  ;;  %v1569_v61 = vmax.bf16 %v1558_v44, %v1554_v54 }
 0x3dc   : >> { %v1515_v47 = vsel %vm1499_vm6, 65537, %v2991_v45  ;;  %vm1498_vm5 = vmpackc.low %vm1482_vm7, %vm1482_vm7  ;;  %vm3630_vm0 = vcmp.ne.s16.totalorder %v2558_v48, 0 }
 0x3dd   : >> { %v1514_v49 = vsel %vm1498_vm5, 65537, %v2991_v45  ;;  %v1465_v50 = vpop.permute.xlu1 %1464  ;;  %v1462_v51 = vpop.permute.xlu0 %1461  ;;  %v1560_v46 = vsel %vm3630_vm0, %v3426_v14, 4286578559  ;;  %v1561_v48 = vsel %vm3630_vm0, %v3422_v13, 4286578559  ;;  %vm1624_vm5 = vcmp.lt.s32.totalorder %v944_v2, 256 }
 0x3de   : >> { %v2559_v53 = vcombine.low %v1514_v49, %v1515_v47  ;;  %vm1485_vm11 = vcmp.eq.s32.totalorder %v1465_v50, 1  ;;  %vm1484_vm13 = vcmp.eq.s32.totalorder %v1462_v51, 1  ;;  %v1559_v47 = vsel %vm3619_vm14, %v3416_v11, 4286578559  ;;  %v2838_v2 = vld [vmem:[%s3973_s8 + $0x4] ss:$8 sps:$4 sm:$0xff] (%p1387_p11)  }
 0x3df   : >> { %vm1501_vm12 = vmpackc.low %vm1485_vm11, %vm1485_vm11  ;;  %v1568_v51 = vmax.bf16 %v1556_v60, %v1552_v56  ;;  %1874 = vmatprep.subr.bf16.mxu1 (%p1387_p11), %v2838_v2  ;;  %v2853_v11 = vld [vmem:[%s3972_s7 + $0x34] ss:$8 sps:$4 sm:$0xff] (%p1387_p11)   ;;  %v2855_v14 = vld [vmem:[%s3972_s7 + $0x30] ss:$8 sps:$4 sm:$0xff] (%p1387_p11)   ;;  %v1646_v2 = vpack.c.bf16 (%p1387_p11), %v3530_v40, %v3530_v40 }
 0x3e0   : >> { %v1517_v58 = vsel %vm1501_vm12, 65537, %v2991_v45  ;;  %vm1500_vm15 = vmpackc.low %vm1484_vm13, %vm1484_vm13  ;;  %vm3638_vm1 = vcmp.ne.s16.totalorder %v2559_v53, 0  ;;  %1875 = vmatpush1.bf16.msra.mxu1 (%p1387_p11), %v2840_v63  ;;  %v2856_v13 = vld [vmem:[%s3973_s8 + $0x34] ss:$8 sps:$4 sm:$0xff] (%p1387_p11)   ;;  %v2931_v63 = vld [vmem:[%s3975_s10 + $0x40] sm:$0xff] (%p1387_p11)   ;;  %vm2994_vm12 = vmmov (%p1387_p11), 0  }
 0x3e1   : >> { %v1516_v62 = vsel %vm1500_vm15, 65537, %v2991_v45  ;;  %v1471_v21 = vpop.permute.xlu1 %1470  ;;  %v1468_v38 = vpop.permute.xlu0 %1467  ;;  %v1562_v52 = vsel %vm3638_vm1, %v3432_v16, 4286578559  ;;  %v1563_v53 = vsel %vm3638_vm1, %v3428_v15, 4286578559  ;;  %v2933_v40 = vld [vmem:[%s3975_s10 + $0x48] sm:$0xff] (%p1387_p11)  }
 0x3e2   : >> { %v2560_v43 = vcombine.low %v1516_v62, %v1517_v58  ;;  %vm1487_vm2 = vcmp.eq.s32.totalorder %v1471_v21, 1  ;;  %vm1486_vm3 = vcmp.eq.s32.totalorder %v1468_v38, 1  ;;  %v1585_v58 = vmax.bf16 %v1557_v39, %v1553_v59  ;;  %v2859_v15 = vld [vmem:[%s3972_s7 + $0x44] ss:$8 sps:$4 sm:$0xff] (%p1387_p11)   ;;  %v2858_v16 = vld [vmem:[%s3973_s8 + $0x30] ss:$8 sps:$4 sm:$0xff] (%p1387_p11)  }
 0x3e3   : >> { %vm1503_vm4 = vmpackc.low %vm1487_vm2, %vm1487_vm2  ;;  %v1586_v62 = vmax.bf16 %v1559_v47, %v1555_v55  ;;  %v1570_v38 = vmax.bf16 %v1568_v51, %v1560_v46  ;;  %v1571_v6 = vmax.bf16 %v1569_v61, %v1562_v52  ;;  %vm2350_vm13 = vcmask (%p1387_p11), 523264  }
 0x3e4   : >> { %vm3654_vm6 = vcmp.ne.s16.totalorder %v2560_v43, 0  ;;  %v1519_v50 = vsel %vm1503_vm4, 65537, %v2991_v45  ;;  %vm1502_vm7 = vmpackc.low %vm1486_vm3, %vm1486_vm3  ;;  %v1587_v60 = vmax.bf16 %v1585_v58, %v1561_v48 }
 0x3e5   : >> { %v1518_v57 = vsel %vm1502_vm7, 65537, %v2991_v45  ;;  %v1564_v43 = vsel %vm3654_vm6, %v3438_v18, 4286578559  ;;  %v1565_v56 = vsel %vm3654_vm6, %v3434_v17, 4286578559  ;;  %v1588_v4 = vmax.bf16 %v1586_v62, %v1563_v53 }
 0x3e6   : >> { %v2561_v21 = vcombine.low %v1518_v57, %v1519_v50  ;;  %v1572_v54 = vmax.bf16 %v1570_v38, %v1564_v43  ;;  %v1589_v55 = vmax.bf16 %v1587_v60, %v1565_v56  ;;  %v2992_v38 = vmov 1966171168   ;;  %v2862_v17 = vld [vmem:[%s3973_s8 + $0x44] ss:$8 sps:$4 sm:$0xff] (%p1387_p11)   ;;  %v2861_v18 = vld [vmem:[%s3972_s7 + $0x40] ss:$8 sps:$4 sm:$0xff] (%p1387_p11)  }
 0x3e7   : >> { %v1608_v43 = vunpack.c.l.s4 %v2992_v38  ;;  %v2901_v38 = vld [vmem:[%s3972_s7 + $0xb4] ss:$8 sps:$4 sm:$0xff] (%p1387_p11)  }
 0x3e8   : >> { %vm1551_vm8 = vcmp.ne.s16.totalorder %v2561_v21, 0 }
 0x3e9   : >> { %v1566_v41 = vsel %vm1551_vm8, %v3444_v20, 4286578559  ;;  %v1567_v45 = vsel %vm1551_vm8, %v3440_v19, 4286578559  ;;  %v2865_v19 = vld [vmem:[%s3972_s7 + $0x54] ss:$8 sps:$4 sm:$0xff] (%p1387_p11)  }
 0x3ea   : >> { %v1573_v59 = vmax.bf16 %v1571_v6, %v1566_v41  ;;  %v1590_v39 = vmax.bf16 %v1588_v4, %v1567_v45  ;;  %v1609_v41 = vunpack.c.0.s8 %v1608_v43  ;;  %v2864_v20 = vld [vmem:[%s3973_s8 + $0x40] ss:$8 sps:$4 sm:$0xff] (%p1387_p11)  }
 0x3eb   : > { %v2900_v43 = vld [vmem:[%s3973_s8 + $0xa0] ss:$8 sps:$4 sm:$0xff] (%p1387_p11)  }
 0x3ec   : >> { %v1574_v44 = vmax.bf16 %v1573_v59, %v1572_v54  ;;  %v1591_v47 = vmax.bf16 %v1590_v39, %v1589_v55  ;;  %v1612_v39 = vsub.s32 %v1609_v41, %v3326_v3  ;;  %v2909_v41 = vld [vmem:[%s3972_s7 + $0xc0] ss:$8 sps:$4 sm:$0xff] (%p1387_p11)  }
 0x3ee   : >> { %v1575_v46 = vunpack.i.l.bf16 %v1574_v44  ;;  %v1576_v50 = vunpack.i.h.bf16 %v1574_v44  ;;  %v1592_v51 = vunpack.i.l.bf16 %v1591_v47  ;;  %v1593_v57 = vunpack.i.h.bf16 %v1591_v47 }
 0x3f0   : >> { %v1577_v49 = vmax.f32 %v1575_v46, %v1576_v50  ;;  %v1594_v48 = vmax.f32 %v1592_v51, %v1593_v57  ;;  %v2835_v57 = vld [vmem:[%s3972_s7 + $0x4] ss:$8 sps:$4 sm:$0xff] (%p1387_p11)  }
 0x3f1   : > { %2075 = vmatprep.subr.bf16.mxu0 (%p1387_p11), %v2835_v57  ;;  %v2924_v57 = vld [vmem:[%s3973_s8 + $0xe0] ss:$8 sps:$4 sm:$0xff] (%p1387_p11)  }
 0x3f2   : >> { %v1578_v52 = vrot.slane %v1577_v49, 4  ;;  %v1595_v53 = vrot.slane %v1594_v48, 4 }
 0x3f4   : >> { %v1579_v58 = vmax.f32 %v1577_v49, %v1578_v52  ;;  %v1596_v61 = vmax.f32 %v1594_v48, %v1595_v53  ;;  %v1647_v49 = vpack.c.bf16 (%p1387_p11), %v3532_v42, %v3532_v42  ;;  %v1639_v48 = vsel (%p1387_p11), %vm1636_vm9, 1, %v2990_v7  ;;  %v2837_v52 = vld [vmem:[%s3972_s7] ss:$8 sps:$4 sm:$0xff] (%p1387_p11)   ;;  %v2844_v7 = vld [vmem:[%s3973_s8 + $0x14] ss:$8 sps:$4 sm:$0xff] (%p1387_p11)  }
 0x3f5   : > { %1641 = vperm.xlu0 (%p1387_p11), %2834, %v1639_v48   ;;  %2076 = vmatpush1.bf16.msra.mxu0 (%p1387_p11), %v2837_v52  ;;  %v2892_v42 = vld [vmem:[%s3973_s8 + $0x94] ss:$8 sps:$4 sm:$0xff] (%p1387_p11)   ;;  %v2891_v53 = vld [vmem:[%s3972_s7 + $0x90] ss:$8 sps:$4 sm:$0xff] (%p1387_p11)  }
 0x3f6   : >> { %v1580_v62 = vrot.slane %v1579_v58, 2  ;;  %v1597_v21 = vrot.slane %v1596_v61, 2  ;;  %2107 = vmatprep.mubr.bf16.mxu0 (%p1387_p11), %v1647_v49  ;;  %2077 = vmatprep.subr.bf16.mxu0 (%p1387_p11), %v2841_v0  ;;  %v2928_v49 = vld [vmem:[%s3973_s8 + $0xf4] ss:$8 sps:$4 sm:$0xff] (%p1387_p11)   ;;  %v2927_v48 = vld [vmem:[%s3972_s7 + $0xf0] ss:$8 sps:$4 sm:$0xff] (%p1387_p11)  }
 0x3f7   : > { %1876 = vmatprep.subr.bf16.mxu1 (%p1387_p11), %v2844_v7  ;;  %v2930_v52 = vld [vmem:[%s3973_s8 + $0xf0] ss:$8 sps:$4 sm:$0xff] (%p1387_p11)  }
 0x3f8   : >> { %v1581_v6 = vmax.f32 %v1579_v58, %v1580_v62  ;;  %v1598_v4 = vmax.f32 %v1596_v61, %v1597_v21  ;;  %1877 = vmatpush1.bf16.msra.mxu1 (%p1387_p11), %v2846_v8  ;;  %v2895_v58 = vld [vmem:[%s3972_s7 + $0xa4] ss:$8 sps:$4 sm:$0xff] (%p1387_p11)   ;;  %v2894_v61 = vld [vmem:[%s3973_s8 + $0x90] ss:$8 sps:$4 sm:$0xff] (%p1387_p11)   ;;  %v2897_v21 = vld [vmem:[%s3972_s7 + $0xa0] ss:$8 sps:$4 sm:$0xff] (%p1387_p11)  }
 0x3f9   : > { %2078 = vmatpush1.bf16.msra.mxu0 (%p1387_p11), %v2843_v1  ;;  %1878 = vmatprep.subr.bf16.mxu1 (%p1387_p11), %v2850_v10  ;;  %v2898_v62 = vld [vmem:[%s3973_s8 + $0xa4] ss:$8 sps:$4 sm:$0xff] (%p1387_p11)  }
 0x3fa   : >> { %v1582_v56 = vrot.slane %v1581_v6, 1  ;;  %v1599_v60 = vrot.slane %v1598_v4, 1  ;;  %2079 = vmatprep.subr.bf16.mxu0 (%p1387_p11), %v2847_v5  ;;  %v2934_v10 = vld [vmem:[%s3975_s10 + $0x8] sm:$0xff] (%p1387_p11)  }
 0x3fc   : >> { %v1583_v45 = vmax.f32 %v1581_v6, %v1582_v56  ;;  %v1600_v54 = vmax.f32 %v1598_v4, %v1599_v60  ;;  %1879 = vmatpush1.bf16.msra.mxu1 (%p1387_p11), %v2852_v12  ;;  %v2903_v6 = vld [vmem:[%s3972_s7 + $0xb0] ss:$8 sps:$4 sm:$0xff] (%p1387_p11)   ;;  %v2904_v4 = vld [vmem:[%s3973_s8 + $0xb4] ss:$8 sps:$4 sm:$0xff] (%p1387_p11)   ;;  %v2907_v60 = vld [vmem:[%s3972_s7 + $0xc4] ss:$8 sps:$4 sm:$0xff] (%p1387_p11)  }
 0x3fd   : > { %2080 = vmatpush1.bf16.msra.mxu0 (%p1387_p11), %v2849_v9  ;;  %1880 = vmatprep.subr.bf16.mxu1 (%p1387_p11), %v2856_v13  ;;  %v2906_v56 = vld [vmem:[%s3973_s8 + $0xb0] ss:$8 sps:$4 sm:$0xff] (%p1387_p11)   ;;  %v2932_v9 = vld [vmem:[%s3975_s10] sm:$0xff] (%p1387_p11)  }
 0x3fe   : >> { %v1584_v55 = vpack.i.bf16 %v1583_v45, %v1583_v45  ;;  %v1601_v59 = vpack.i.bf16 %v1600_v54, %v1600_v54  ;;  %2081 = vmatprep.subr.bf16.mxu0 (%p1387_p11), %v2853_v11  ;;  %v2910_v45 = vld [vmem:[%s3973_s8 + $0xc4] ss:$8 sps:$4 sm:$0xff] (%p1387_p11)   ;;  %v2912_v54 = vld [vmem:[%s3973_s8 + $0xc0] ss:$8 sps:$4 sm:$0xff] (%p1387_p11)   ;;  %v2935_v11 = vld [vmem:[%s3975_s10 + $0x50] sm:$0xff] (%p1387_p11)  }
 0x3ff   : > { %v2936_v12 = vld [vmem:[%s3975_s10 + $0x10] sm:$0xff] (%p1387_p11)   ;;  %v2937_v13 = vld [vmem:[%s3975_s10 + $0x58] sm:$0xff] (%p1387_p11)  }
 0x400   : >> { %v1602_v44 = vunpack.c.l.bf16 %v1584_v55  ;;  %v1603_v47 = vunpack.c.l.bf16 %v1601_v59  ;;  %1881 = vmatpush1.bf16.msra.mxu1 (%p1387_p11), %v2858_v16  ;;  %v2913_v55 = vld [vmem:[%s3972_s7 + $0xd4] ss:$8 sps:$4 sm:$0xff] (%p1387_p11)   ;;  %v2915_v59 = vld [vmem:[%s3972_s7 + $0xd0] ss:$8 sps:$4 sm:$0xff] (%p1387_p11)   ;;  %v2940_v16 = vld [vmem:[%s3975_s10 + $0x20] sm:$0xff] (%p1387_p11)  }
 0x401   : > { %2082 = vmatpush1.bf16.msra.mxu0 (%p1387_p11), %v2855_v14  ;;  %1882 = vmatprep.subr.bf16.mxu1 (%p1387_p11), %v2862_v17  ;;  %v2938_v14 = vld [vmem:[%s3975_s10 + $0x18] sm:$0xff] (%p1387_p11)   ;;  %v2941_v17 = vld [vmem:[%s3975_s10 + $0x68] sm:$0xff] (%p1387_p11)  }
 0x402   : >> { %v1606_v46 = vcombine.low %v1602_v44, %v1603_v47  ;;  %1389 = sbr.rel (!%p1387_p11) target bundleno = 835 (0x343), region = 175  ;;  %2083 = vmatprep.subr.bf16.mxu0 (%p1387_p11), %v2859_v15  ;;  %v2918_v44 = vld [vmem:[%s3973_s8 + $0xd0] ss:$8 sps:$4 sm:$0xff] (%p1387_p11)   ;;  %v2919_v47 = vld [vmem:[%s3972_s7 + $0xe4] ss:$8 sps:$4 sm:$0xff] (%p1387_p11)  }
 0x403   : > { %v2939_v15 = vld [vmem:[%s3975_s10 + $0x60] sm:$0xff] (%p1387_p11)  }
 0x404   : >> { %v1613_v50 = vrot.slane %v1606_v46, %v1612_v39  ;;  %1883 = vmatpush1.bf16.msra.mxu1 (%p1387_p11), %v2864_v20  ;;  %v2921_v46 = vld [vmem:[%s3972_s7 + $0xe0] ss:$8 sps:$4 sm:$0xff] (%p1387_p11)   ;;  %v2944_v20 = vld [vmem:[%s3975_s10 + $0x30] sm:$0xff] (%p1387_p11)  }
 0x405   : > { %2084 = vmatpush1.bf16.msra.mxu0 (%p1387_p11), %v2861_v18  ;;  %1884 = vmatprep.subr.bf16.mxu1 (%p1387_p11), %v2868_v22  ;;  %v2942_v18 = vld [vmem:[%s3975_s10 + $0x28] sm:$0xff] (%p1387_p11)   ;;  %v2945_v22 = vld [vmem:[%s3975_s10 + $0x78] sm:$0xff] (%p1387_p11)  }
 0x406   : >> { %v1620_v51 = vrot.slane %v1613_v50, %v1612_v39  ;;  %2085 = vmatprep.subr.bf16.mxu0 (%p1387_p11), %v2865_v19  ;;  %v2916_v39 = vld [vmem:[%s3973_s8 + $0xd4] ss:$8 sps:$4 sm:$0xff] (%p1387_p11)   ;;  %v2922_v50 = vld [vmem:[%s3973_s8 + $0xe4] ss:$8 sps:$4 sm:$0xff] (%p1387_p11)  }
 0x407   : > { %v2943_v19 = vld [vmem:[%s3975_s10 + $0x70] sm:$0xff] (%p1387_p11)  }
 0x408   : >> { %1634 = vst.msk [vmem:[%s1633_s28] ss:$8 sm:$0x3] %vm1624_vm5, %v1620_v51  ;;  %1885 = vmatpush1.bf16.msra.mxu1 (%p1387_p11), %v2870_v25  ;;  %v2925_v51 = vld [vmem:[%s3972_s7 + $0xf4] ss:$8 sps:$4 sm:$0xff] (%p1387_p11)   ;;  %v2993_v25 = vmov (%p1387_p11), 0.0  }
 0x409   : > { %2086 = vmatpush1.bf16.msra.mxu0 %v2867_v23  ;;  %1886 = vmatprep.subr.bf16.mxu1 %v2874_v26  ;;  %v2946_v23 = vld [vmem:[%s3975_s10 + $0x38] sm:$0xff]   ;;  %v2948_v26 = vld [vmem:[%s3977_s12 + $0x8] sm:$0xff]  }
 0x40a   : > { %2087 = vmatprep.subr.bf16.mxu0 %v2871_v24  ;;  %v2947_v24 = vld [vmem:[%s3977_s12] sm:$0xff]  }
 0x40c   : > { %1887 = vmatpush1.bf16.msra.mxu1 %v2876_v29 }
 0x40d   : > { %2088 = vmatpush1.bf16.msra.mxu0 %v2873_v27  ;;  %1888 = vmatprep.subr.bf16.mxu1 %v2880_v30 }
 0x40e   : > { %2089 = vmatprep.subr.bf16.mxu0 %v2877_v28 }
 0x40f   : > { %v1638_v0 = vld [vmem:[#allocation3 + $0x8] sm:$0xff]  ;;  %v1637_v1 = vld [vmem:[#allocation3] sm:$0xff] }
 0x410   : > { %1889 = vmatpush1.bf16.msra.mxu1 %v2882_v33  ;;  %v2597_v7 = vpack.c.bf16 %v1638_v0, %v1638_v0  ;;  %v2600_v5 = vpack.c.bf16 %v1637_v1, %v1637_v1 }
 0x411   : > { %2090 = vmatpush1.bf16.msra.mxu0 %v2879_v31  ;;  %1890 = vmatprep.subr.bf16.mxu1 %v2886_v34  ;;  %v2116_v31 = vld [vmem:[%s3974_s9] sm:$0x3] }
 0x412   : > { %2091 = vmatprep.subr.bf16.mxu0 %v2883_v32  ;;  %v4003_v32 = vsub.s32 0, %v3326_v3 }
 0x414   : > { %1891 = vmatpush1.bf16.msra.mxu1 %v2888_v37  ;;  %v2121_v33 = vrot.slane %v2116_v31, %v4003_v32 }
 0x415   : > { %2092 = vmatpush1.bf16.msra.mxu0 %v2885_v35  ;;  %1892 = vmatprep.subr.bf16.mxu1 %v2892_v42  ;;  %v4004_v35 = vsub.s32 1, %v3326_v3  ;;  %v2950_v3 = vld [vmem:[%s3977_s12 + $0x18] sm:$0xff]  }
 0x416   : > { %2093 = vmatprep.subr.bf16.mxu0 %v2889_v36 }
 0x417   : > { %v2125_v36 = vrot.slane %v2116_v31, %v4004_v35 }
 0x418   : > { %1893 = vmatpush1.bf16.msra.mxu1 %v2894_v61 }
 0x419   : > { %2094 = vmatpush1.bf16.msra.mxu0 %v2891_v53  ;;  %1894 = vmatprep.subr.bf16.mxu1 %v2898_v62 }
 0x41a   : > { %2095 = vmatprep.subr.bf16.mxu0 %v2895_v58 }
 0x41c   : > { %1895 = vmatpush1.bf16.msra.mxu1 %v2900_v43 }
 0x41d   : > { %2096 = vmatpush1.bf16.msra.mxu0 %v2897_v21  ;;  %1896 = vmatprep.subr.bf16.mxu1 %v2904_v4 }
 0x41e   : > { %2097 = vmatprep.subr.bf16.mxu0 %v2901_v38 }
 0x420   : > { %1897 = vmatpush1.bf16.msra.mxu1 %v2906_v56  ;;  %v2949_v56 = vld [vmem:[%s3977_s12 + $0x10] sm:$0xff]  }
 0x421   : > { %2098 = vmatpush1.bf16.msra.mxu0 %v2903_v6  ;;  %1898 = vmatprep.subr.bf16.mxu1 %v2910_v45 }
 0x422   : > { %2099 = vmatprep.subr.bf16.mxu0 %v2907_v60 }
 0x424   : > { %1899 = vmatpush1.bf16.msra.mxu1 %v2912_v54 }
 0x425   : > { %2100 = vmatpush1.bf16.msra.mxu0 %v2909_v41  ;;  %1900 = vmatprep.subr.bf16.mxu1 %v2916_v39  ;;  %v2634_v41 = vld [vmem:[%s3976_s11] ss:$0 sm:$0xff] }
 0x426   : > { %2101 = vmatprep.subr.bf16.mxu0 %v2913_v55 }
 0x428   : > { %1901 = vmatpush1.bf16.msra.mxu1 %v2918_v44 }
 0x429   : > { %2102 = vmatpush1.bf16.msra.mxu0 %v2915_v59  ;;  %1902 = vmatprep.subr.bf16.mxu1 %v2922_v50 }
 0x42a   : > { %2103 = vmatprep.subr.bf16.mxu0 %v2919_v47 }
 0x42c   : > { %1903 = vmatpush1.bf16.msra.mxu1 %v2924_v57 }
 0x42d   : > { %2104 = vmatpush1.bf16.msra.mxu0 %v2921_v46  ;;  %1904 = vmatprep.subr.bf16.mxu1 %v2928_v49  ;;  %v2651_v46 = vld [vmem:[%s3978_s13] ss:$0 sm:$0xff] }
 0x42e   : > { %2105 = vmatprep.subr.bf16.mxu0 %v2925_v51 }
 0x430   : > { %1905 = vmatpush1.bf16.msra.mxu1 %v2930_v52 }
 0x431   : > { %2106 = vmatpush1.bf16.msra.mxu0 %v2927_v48  ;;  %2666 = vmatprep.subr.bf16.mxu1 %v2931_v63 }
 0x432   : > { %2693 = vmatprep.subr.bf16.mxu0 %v2993_v25 }
 0x434   : > { %2108 = vmatmul.mubr.bf16.vlgmr.msra.gmra.mrb[4].mxu0 %v1646_v2 }
 0x435   : > { %2694 = vmatpush3.bf16.msra.mxu0 %v2947_v24  ;;  %2701 = vmatprep.mubr.msk.bf16.mxu0 %vm2994_vm12, %v2993_v25 }
 0x436   : > { %2695 = vmatprep.subr.bf16.mxu0 %v2993_v25 }
 0x439   : > { %2696 = vmatpush3.bf16.msra.mxu0 %v2948_v26 }
 0x43a   : > { %2697 = vmatprep.subr.bf16.mxu0 %v2993_v25 }
 0x43d   : > { %2698 = vmatpush3.bf16.msra.mxu0 %v2949_v56 }
 0x43e   : > { %2699 = vmatprep.subr.bf16.mxu0 %v2993_v25 }
 0x441   : > { %2700 = vmatpush3.bf16.msra.mxu0 %v2950_v3 }
 0x474   : > { %v1642_v8 = vpop.permute.xlu0 %1641 }
 0x475   : > { %vm1643_vm10 = vcmp.eq.s32.totalorder %v1642_v8, 1 }
 0x476   : > { %vm2596_vm11 = vmpackc.low %vm1643_vm10, %vm1643_vm10 }
 0x477   : > { %2598 = vmatprep.mubr.msk.bf16.mxu1 %vm2596_vm11, %v2597_v7 }
 0x478   : > { %2601 = vmatmul.mubr.msk.bf16.vlgmr.msra.gmra.mrb[0].mxu1 %vm2596_vm11, %v2600_v5 }
 0x479   : > { %2667 = vmatpush3.bf16.msra.mxu1 %v2932_v9 }
 0x47a   : > { %2668 = vmatprep.subr.bf16.mxu1 %v2933_v40 }
 0x47d   : > { %2669 = vmatpush3.bf16.msra.mxu1 %v2934_v10 }
 0x47e   : > { %2670 = vmatprep.subr.bf16.mxu1 %v2935_v11 }
 0x481   : > { %2671 = vmatpush3.bf16.msra.mxu1 %v2936_v12 }
 0x482   : > { %2672 = vmatprep.subr.bf16.mxu1 %v2937_v13 }
 0x485   : > { %2673 = vmatpush3.bf16.msra.mxu1 %v2938_v14 }
 0x486   : > { %2674 = vmatprep.subr.bf16.mxu1 %v2939_v15 }
 0x489   : > { %2675 = vmatpush3.bf16.msra.mxu1 %v2940_v16 }
 0x48a   : > { %2676 = vmatprep.subr.bf16.mxu1 %v2941_v17 }
 0x48d   : > { %2677 = vmatpush3.bf16.msra.mxu1 %v2942_v18 }
 0x48e   : > { %2678 = vmatprep.subr.bf16.mxu1 %v2943_v19 }
 0x491   : > { %2679 = vmatpush3.bf16.msra.mxu1 %v2944_v20 }
 0x492   : > { %2680 = vmatprep.subr.bf16.mxu1 %v2945_v22 }
 0x495   : > { %2681 = vmatpush3.bf16.msra.mxu1 %v2946_v23 }
 0x507   : > { %v2109_v27 = vpop.f32.mrb[4].mxu0 }
 0x508   : > { %v2111_v28 = vpop.f32.mrb[5].mxu0 }
 0x509   : > { %v2113_v29 = vpop.f32.mrb[6].mxu0 }
 0x50a   : > { %v2114_v30 = vpop.f32.mrb[7].mxu0 }
 0x54b   : > { %v1908_v34 = vpop.f32.mrb[0].mxu1 }
 0x54c   : > { %v2110_v37 = vadd.f32 %v2109_v27, %v1908_v34  ;;  %v1910_v42 = vpop.f32.mrb[1].mxu1 }
 0x54d   : > { %v2112_v53 = vadd.f32 %v2111_v28, %v1910_v42  ;;  %v1912_v58 = vpop.f32.mrb[2].mxu1 }
 0x54e   : > { %v2128_v61 = vadd.f32 %v2121_v33, %v2110_v37  ;;  %v1913_v62 = vpop.f32.mrb[3].mxu1 }
 0x54f   : > { %v2129_v21 = vadd.f32 %v2125_v36, %v2112_v53 }
 0x550   : > { %v2130_v38 = vmax.f32 %v2128_v61, 0.0 }
 0x551   : > { %v2131_v43 = vmax.f32 %v2129_v21, 0.0 }
 0x552   : > { %v2132_v4 = vpack.c.bf16 %v2130_v38, %v2130_v38 }
 0x553   : > { %v2133_v6 = vpack.c.bf16 %v2131_v43, %v2131_v43 }
 0x555   : > { %2301 = vmatprep.mubr.bf16.mxu1 %v2133_v6 }
 0x556   : > { %2302 = vmatmul.mubr.bf16.vlgmr.msra.gmra.mrb[4].mxu1 %v2132_v4 }
 0x629   : > { %v2682_v60 = vpop.f32.mrb[4].mxu1 }
 0x62a   : > { %v2683_v45 = vpop.f32.mrb[5].mxu1 }
 0x62b   : > { %v2684_v54 = vadd.f32 %v2683_v45, %v2682_v60  ;;  %v2685_v55 = vpop.f32.mrb[6].mxu1 }
 0x62c   : > { %v2686_v59 = vpop.f32.mrb[7].mxu1 }
 0x62d   : > { %v2304_v39 = vadd.f32 %v2684_v54, %v2634_v41 }
 0x62f   : > { %v2309_v44 = vmax.f32 %v2304_v39, 0.0 }
 0x631   : > { %v2310_v47 = vpack.c.bf16 %v2309_v44, %v2309_v44 }
 0x633   : > { %2702 = vmatmul.mubr.msk.bf16.vlgmr.msra.gmra.mrb[8].mxu0 %vm2350_vm13, %v2310_v47 }
 0x706   : > { %v2388_v50 = vpop.f32.mrb[8].mxu0 }
 0x707   : > { %v2389_v51 = vadd.f32 %v2651_v46, %v2388_v50  ;;  %v2703_v57 = vpop.f32.mrb[9].mxu0 }
 0x708   : > { %v2391_v49 = vpop.f32.mrb[10].mxu0 }
 0x709   : > { %v2657_v48 = vmul.f32 -1.442695, %v2389_v51  ;;  %v2704_v52 = vpop.f32.mrb[11].mxu0 }
 0x70b   : > { %2951 = vpow2.f32 %v2657_v48 }
 0x715   : > { %v2952_v2 = vpop.eup %2951 }
 0x716   : > { %v2397_v63 = vadd.f32 1.0, %v2952_v2 }
 0x718   : > { %2953 = vrcp.f32 %v2397_v63 }
 0x722   : > { %v2954_v0 = vpop.eup %2953 }
 0x723   : > { %2400 = vst [vmem:[%s3979_s14] sm:$0xff] %v2954_v0 }
 0x724 PF: > { %s24_s15 = sadd.s32 1, %s2983_s15   ;;  %s4005_s29 = sld [smem:[#allocation7_spill]] }
 0x725   : > { %p21_p12 = scmp.ge.s32.totalorder %s24_s15, 7   ;;  %s4006_s30 = sld [smem:[#allocation8_spill]] }
 0x727   :  { %23 = sbr.rel (!%p21_p12) target bundleno = 2 (0x2), region = 186 }

</bundles_post_ra>
